<compile_context>
chip_gen: v5e
topology: v5e:2x2
jax: 0.10.0
libtpu: 0.0.40
codegen_flags: <defaults>
</compile_context>

<pallas_src>
import functools

import jax
import jax.numpy as jnp
from jax.experimental import pallas as pl
from jax.experimental.pallas import tpu as pltpu

# ----------------------------- hyperparameters ------------------------------
B = 2              # batch
SEQ = 8            # sequence length of x (inp/target have N = SEQ-1 = 7)
N = SEQ - 1        # true (unpadded) model sequence length
NP = 8             # sequence length padded to the 8-sublane tile
DIM_IN = 4         # continuous input feature dim
DIM = 32           # model dim
DIM_OUT = 4        # continuous output feature dim
HEADS = 4
DH = DIM // HEADS
FF_INNER = 2 * DIM
DEPTH = 2
MAX_SEQ_LEN = 16
LN_EPS = 1e-5


# ------------------------------ fused Pallas kernel ---------------------------
def _fused_forward_loss_kernel(
    inp_ref, tgt_ref, w_in_ref, pos_ref,
    attn_g_ref, wq_ref, wk_ref, wv_ref, wo_ref,
    ff_g_ref, w_ff1_ref, w_ff2_ref,
    final_g_ref, w_out_ref, loss_ref):
    f32 = jnp.float32

    def layernorm(x, g):  # x: [NP, DIM] f32, g: [1, DIM]
        mean = jnp.mean(x, axis=-1, keepdims=True)
        var = jnp.mean((x - mean) ** 2, axis=-1, keepdims=True)
        return (x - mean) * jax.lax.rsqrt(var + LN_EPS) * g

    # project_in + scaled absolute positional embedding (pos already scaled on host)
    x = inp_ref[...].astype(f32)                                       # [NP, DIM_IN]
    h = jnp.dot(x, w_in_ref[...], preferred_element_type=f32)          # [NP, DIM]
    h = h + pos_ref[...]
    # post_emb_norm = Identity, emb_dropout = 0 (identity)

    # causal additive bias, hoisted out of all loops (f32-safe fill value)
    row = jax.lax.broadcasted_iota(jnp.int32, (NP, NP), 0)
    col = jax.lax.broadcasted_iota(jnp.int32, (NP, NP), 1)
    bias = jnp.where(col <= row, 0.0, -1e30).astype(f32)               # [NP, NP]

    for l in range(DEPTH):                       # static unroll over depth
        # ---- pre-norm causal multi-head attention (head-major weights) ----
        normed = layernorm(h, attn_g_ref[l])                           # [NP, DIM]
        attn_acc = jnp.zeros((NP, DIM), f32)
        for hh in range(HEADS):                  # static unroll; all operands lane-0
            qh = jnp.dot(normed, wq_ref[l, hh], preferred_element_type=f32)  # [NP, DH]
            kh = jnp.dot(normed, wk_ref[l, hh], preferred_element_type=f32)
            vh = jnp.dot(normed, wv_ref[l, hh], preferred_element_type=f32)
            # scale (DH**-0.5) is pre-folded into wq on the host
            s = jnp.einsum("qd,kd->qk", qh, kh,
                           preferred_element_type=f32) + bias                # [NP, NP]
            s = s - jnp.max(s, axis=-1, keepdims=True)
            p = jnp.exp(s)
            p = p / jnp.sum(p, axis=-1, keepdims=True)                 # exact softmax
            o = jnp.dot(p, vh, preferred_element_type=f32)             # [NP, DH]
            attn_acc = attn_acc + jnp.dot(o, wo_ref[l, hh],
                                          preferred_element_type=f32)  # accumulate
        h = h + attn_acc

        # ---- pre-norm GELU feedforward ----
        normed = layernorm(h, ff_g_ref[l])
        mid = jnp.dot(normed, w_ff1_ref[l], preferred_element_type=f32)
        # TODO(synk): PyTorch nn.GELU() defaults to the exact erf form; tanh approx used here.
        mid = jax.nn.gelu(mid, approximate=True)
        h = h + jnp.dot(mid, w_ff2_ref[l], preferred_element_type=f32)

    # final LayerNorm + project_out
    h = layernorm(h, final_g_ref[...])
    out = jnp.dot(h, w_out_ref[...], preferred_element_type=f32)       # [NP, DIM_OUT]

    # fused nn.MSELoss(reduction='none') partial sum for this batch element.
    # Pad row (index >= N) is excluded; wrapper divides by the true element count.
    d = out - tgt_ref[...].astype(f32)
    valid = jax.lax.broadcasted_iota(jnp.int32, (NP, DIM_OUT), 0) < N
    d = jnp.where(valid, d, 0.0)
    partial = jnp.sum(d * d)
    loss_ref[...] = jnp.full((8, 128), partial, dtype=f32)             # lane-dense store


# ------------------------------ kernel wrapper --------------------------------
def _replicated_spec(shape):
    zeros = (0,) * len(shape)
    return pl.BlockSpec(tuple(shape), lambda b, _z=zeros: _z)


def continuous_autoregressive_loss(params, x, mask=None):
    # ContinuousAutoregressiveWrapper.forward (mask=None path)
    if mask is not None:
        # TODO(synk): masked loss reduction (loss[mask] / equal_loss_weight_batch
        # masked_mean) needs dynamic boolean gather; not implemented in-kernel.
        raise NotImplementedError("mask-dependent loss reduction not implemented")

    inp, target = x[:, :-1], x[:, 1:]
    b, n, _ = inp.shape
    assert (b, n) == (B, N), "kernel is specialized to the module hyperparameters"

    # pad sequence to the 8-sublane tile; pad rows are masked out of the loss
    pad = NP - N
    inp_p = jnp.pad(inp, ((0, 0), (0, pad), (0, 0)))
    tgt_p = jnp.pad(target, ((0, 0), (0, pad), (0, 0)))

    # host-side constant prep: scaled positional embedding, attention scale folded into wq
    pos = params["pos_emb"][:NP] * (DIM ** -0.5)                       # [NP, DIM]
    wq = params["wq"] * (DH ** -0.5)

    operands = (
        inp_p, tgt_p,
        params["w_in"], pos,
        params["attn_norm_g"], wq, params["wk"], params["wv"], params["wo"],
        params["ff_norm_g"], params["w_ff1"], params["w_ff2"],
        params["final_norm_g"], params["w_out"],
    )
    in_specs = [
        pl.BlockSpec((None, NP, DIM_IN), lambda bb: (bb, 0, 0)),
        pl.BlockSpec((None, NP, DIM_OUT), lambda bb: (bb, 0, 0)),
    ] + [_replicated_spec(a.shape) for a in operands[2:]]

    partials = pl.pallas_call(
        _fused_forward_loss_kernel,
        grid=(B,),
        out_shape=jax.ShapeDtypeStruct((B, 8, 128), jnp.float32),
        in_specs=in_specs,
        out_specs=pl.BlockSpec((None, 8, 128), lambda bb: (bb, 0, 0)),
        compiler_params=pltpu.CompilerParams(
            dimension_semantics=("parallel",)),     # second TC on v7x; no-op on v5e/v6e
    )(*operands)

    # mean over all B*N*DIM_OUT true elements (pad rows were zeroed in-kernel)
    return jnp.sum(partials[:, 0, 0]) / (B * N * DIM_OUT)


# ------------------------------- parameters -----------------------------------
def init_params(key):
    def nrm(k, shape, scale=0.02):
        return scale * jax.random.normal(k, shape, dtype=jnp.float32)

    keys = jax.random.split(key, 9)
    return {
        "w_in": nrm(keys[0], (DIM_IN, DIM)),
        "pos_emb": nrm(keys[1], (MAX_SEQ_LEN, DIM), scale=1.0),
        # per-layer weights stacked on a leading DEPTH axis; attention weights head-major
        "attn_norm_g": jnp.ones((DEPTH, 1, DIM), jnp.float32),
        "wq": nrm(keys[2], (DEPTH, HEADS, DIM, DH)),
        "wk": nrm(keys[3], (DEPTH, HEADS, DIM, DH)),
        "wv": nrm(keys[4], (DEPTH, HEADS, DIM, DH)),
        "wo": nrm(keys[5], (DEPTH, HEADS, DH, DIM)),
        "ff_norm_g": jnp.ones((DEPTH, 1, DIM), jnp.float32),
        "w_ff1": nrm(keys[6], (DEPTH, DIM, FF_INNER)),
        "w_ff2": nrm(keys[7], (DEPTH, FF_INNER, DIM)),
        "final_norm_g": jnp.ones((1, DIM), jnp.float32),
        "w_out": nrm(keys[8], (DIM, DIM_OUT)),
    }


# ----------------------------------- main --------------------------------------
if __name__ == "__main__":
    key = jax.random.PRNGKey(0)
    pkey, xkey = jax.random.split(key)
    params = init_params(pkey)
    x = jax.random.normal(xkey, (B, SEQ, DIM_IN), dtype=jnp.float32)

    loss_fn = jax.jit(functools.partial(continuous_autoregressive_loss, params))
    loss = loss_fn(x)
    jax.block_until_ready(loss)
    assert loss.shape == () and bool(jnp.isfinite(loss))
    print("KERNEL_OK")
</pallas_src>

<mosaic_0001>
module attributes {stable_mosaic.version = 11 : i64} {
  func.func @_fused_forward_loss_kernel(%arg0: i32, %arg1: memref<1x8x4xf32, #tpu.memory_space<vmem>>, %arg2: memref<1x8x4xf32, #tpu.memory_space<vmem>>, %arg3: memref<4x32xf32, #tpu.memory_space<vmem>>, %arg4: memref<8x32xf32, #tpu.memory_space<vmem>>, %arg5: memref<2x1x32xf32, #tpu.memory_space<vmem>>, %arg6: memref<2x4x32x8xf32, #tpu.memory_space<vmem>>, %arg7: memref<2x4x32x8xf32, #tpu.memory_space<vmem>>, %arg8: memref<2x4x32x8xf32, #tpu.memory_space<vmem>>, %arg9: memref<2x4x8x32xf32, #tpu.memory_space<vmem>>, %arg10: memref<2x1x32xf32, #tpu.memory_space<vmem>>, %arg11: memref<2x32x64xf32, #tpu.memory_space<vmem>>, %arg12: memref<2x64x32xf32, #tpu.memory_space<vmem>>, %arg13: memref<1x32xf32, #tpu.memory_space<vmem>>, %arg14: memref<32x4xf32, #tpu.memory_space<vmem>>, %arg15: memref<1x8x128xf32, #tpu.memory_space<vmem>>) attributes {dimension_semantics = [#tpu.dimension_semantics<parallel>], iteration_bounds = array<i64: 2>, scalar_prefetch = 0 : i64, scratch_operands = 0 : i64, tpu.core_type = #tpu.core_type<tc>, window_params = [{transform_indices = @transform_0, window_bounds = array<i64: 1, 8, 4>}, {transform_indices = @transform_1, window_bounds = array<i64: 1, 8, 4>}, {pipeline_mode = #tpu.pipeline_mode<synchronous>, transform_indices = @transform_2, window_bounds = array<i64: 4, 32>}, {pipeline_mode = #tpu.pipeline_mode<synchronous>, transform_indices = @transform_3, window_bounds = array<i64: 8, 32>}, {pipeline_mode = #tpu.pipeline_mode<synchronous>, transform_indices = @transform_4, window_bounds = array<i64: 2, 1, 32>}, {pipeline_mode = #tpu.pipeline_mode<synchronous>, transform_indices = @transform_5, window_bounds = array<i64: 2, 4, 32, 8>}, {pipeline_mode = #tpu.pipeline_mode<synchronous>, transform_indices = @transform_6, window_bounds = array<i64: 2, 4, 32, 8>}, {pipeline_mode = #tpu.pipeline_mode<synchronous>, transform_indices = @transform_7, window_bounds = array<i64: 2, 4, 32, 8>}, {pipeline_mode = #tpu.pipeline_mode<synchronous>, transform_indices = @transform_8, window_bounds = array<i64: 2, 4, 8, 32>}, {pipeline_mode = #tpu.pipeline_mode<synchronous>, transform_indices = @transform_9, window_bounds = array<i64: 2, 1, 32>}, {pipeline_mode = #tpu.pipeline_mode<synchronous>, transform_indices = @transform_10, window_bounds = array<i64: 2, 32, 64>}, {pipeline_mode = #tpu.pipeline_mode<synchronous>, transform_indices = @transform_11, window_bounds = array<i64: 2, 64, 32>}, {pipeline_mode = #tpu.pipeline_mode<synchronous>, transform_indices = @transform_12, window_bounds = array<i64: 1, 32>}, {pipeline_mode = #tpu.pipeline_mode<synchronous>, transform_indices = @transform_13, window_bounds = array<i64: 32, 4>}, {transform_indices = @transform_14, window_bounds = array<i64: 1, 8, 128>}]} {
    %c0 = arith.constant 0 : index
    %c0_0 = arith.constant 0 : index
    %c0_1 = arith.constant 0 : index
    %0 = vector.load %arg1[%c0, %c0_0, %c0_1] : memref<1x8x4xf32, #tpu.memory_space<vmem>>, vector<1x8x4xf32>
    %1 = vector.shape_cast %0 : vector<1x8x4xf32> to vector<8x4xf32>
    %c0_2 = arith.constant 0 : index
    %c0_3 = arith.constant 0 : index
    %2 = vector.load %arg3[%c0_2, %c0_3] : memref<4x32xf32, #tpu.memory_space<vmem>>, vector<4x32xf32>
    %cst = arith.constant dense<0.000000e+00> : vector<8x32xf32>
    %3 = tpu.matmul %1, %2, %cst {dimension_numbers = #tpu.dot_dimension_numbers<[1], [0], [0], [1], [0, 0, 1, 1], [], []>} : vector<8x4xf32>, vector<4x32xf32>, vector<8x32xf32> -> vector<8x32xf32>
    %c0_4 = arith.constant 0 : index
    %c0_5 = arith.constant 0 : index
    %4 = vector.load %arg4[%c0_4, %c0_5] : memref<8x32xf32, #tpu.memory_space<vmem>>, vector<8x32xf32>
    %5 = arith.addf %3, %4 : vector<8x32xf32>
    %6 = tpu.iota {dimensions = array<i32: 0>} : vector<8x8xi32>
    %7 = tpu.iota {dimensions = array<i32: 1>} : vector<8x8xi32>
    %8 = arith.cmpi sle, %7, %6 : vector<8x8xi32>
    %cst_6 = arith.constant 0.000000e+00 : f32
    %cst_7 = arith.constant -1.000000e+30 : f32
    %9 = vector.broadcast %cst_6 : f32 to vector<8x8xf32>
    %10 = vector.broadcast %cst_7 : f32 to vector<8x8xf32>
    %11 = arith.select %8, %9, %10 : vector<8x8xi1>, vector<8x8xf32>
    %c0_8 = arith.constant 0 : index
    %c0_9 = arith.constant 0 : index
    %c0_10 = arith.constant 0 : index
    %12 = vector.load %arg5[%c0_8, %c0_9, %c0_10] : memref<2x1x32xf32, #tpu.memory_space<vmem>>, vector<1x1x32xf32>
    %13 = vector.shape_cast %12 : vector<1x1x32xf32> to vector<1x32xf32>
    %cst_11 = arith.constant dense<0.000000e+00> : vector<8xf32>
    %14 = vector.multi_reduction <add>, %5, %cst_11 [1] : vector<8x32xf32> to vector<8xf32>
    %15 = vector.shape_cast %14 : vector<8xf32> to vector<8x1xf32>
    %cst_12 = arith.constant 3.200000e+01 : f32
    %16 = vector.broadcast %cst_12 : f32 to vector<8x1xf32>
    %17 = arith.divf %15, %16 : vector<8x1xf32>
    %18 = vector.broadcast %17 : vector<8x1xf32> to vector<8x32xf32>
    %19 = arith.subf %5, %18 : vector<8x32xf32>
    %20 = arith.mulf %19, %19 : vector<8x32xf32>
    %cst_13 = arith.constant dense<0.000000e+00> : vector<8xf32>
    %21 = vector.multi_reduction <add>, %20, %cst_13 [1] : vector<8x32xf32> to vector<8xf32>
    %22 = vector.shape_cast %21 : vector<8xf32> to vector<8x1xf32>
    %cst_14 = arith.constant 3.200000e+01 : f32
    %23 = vector.broadcast %cst_14 : f32 to vector<8x1xf32>
    %24 = arith.divf %22, %23 : vector<8x1xf32>
    %25 = vector.broadcast %17 : vector<8x1xf32> to vector<8x32xf32>
    %26 = arith.subf %5, %25 : vector<8x32xf32>
    %cst_15 = arith.constant 9.99999974E-6 : f32
    %27 = vector.broadcast %cst_15 : f32 to vector<8x1xf32>
    %28 = arith.addf %24, %27 : vector<8x1xf32>
    %29 = math.rsqrt %28 : vector<8x1xf32>
    %30 = vector.broadcast %29 : vector<8x1xf32> to vector<8x32xf32>
    %31 = arith.mulf %26, %30 : vector<8x32xf32>
    %32 = vector.broadcast %13 : vector<1x32xf32> to vector<8x32xf32>
    %33 = arith.mulf %31, %32 : vector<8x32xf32>
    %cst_16 = arith.constant 0.000000e+00 : f32
    %34 = vector.broadcast %cst_16 : f32 to vector<8x32xf32>
    %c0_17 = arith.constant 0 : index
    %c0_18 = arith.constant 0 : index
    %c0_19 = arith.constant 0 : index
    %c0_20 = arith.constant 0 : index
    %35 = vector.load %arg6[%c0_17, %c0_18, %c0_19, %c0_20] : memref<2x4x32x8xf32, #tpu.memory_space<vmem>>, vector<1x1x32x8xf32>
    %36 = vector.shape_cast %35 : vector<1x1x32x8xf32> to vector<32x8xf32>
    %cst_21 = arith.constant dense<0.000000e+00> : vector<8x8xf32>
    %37 = tpu.matmul %33, %36, %cst_21 {dimension_numbers = #tpu.dot_dimension_numbers<[1], [0], [0], [1], [0, 0, 1, 1], [], []>} : vector<8x32xf32>, vector<32x8xf32>, vector<8x8xf32> -> vector<8x8xf32>
    %c0_22 = arith.constant 0 : index
    %c0_23 = arith.constant 0 : index
    %c0_24 = arith.constant 0 : index
    %c0_25 = arith.constant 0 : index
    %38 = vector.load %arg7[%c0_22, %c0_23, %c0_24, %c0_25] : memref<2x4x32x8xf32, #tpu.memory_space<vmem>>, vector<1x1x32x8xf32>
    %39 = vector.shape_cast %38 : vector<1x1x32x8xf32> to vector<32x8xf32>
    %cst_26 = arith.constant dense<0.000000e+00> : vector<8x8xf32>
    %40 = tpu.matmul %33, %39, %cst_26 {dimension_numbers = #tpu.dot_dimension_numbers<[1], [0], [0], [1], [0, 0, 1, 1], [], []>} : vector<8x32xf32>, vector<32x8xf32>, vector<8x8xf32> -> vector<8x8xf32>
    %c0_27 = arith.constant 0 : index
    %c0_28 = arith.constant 0 : index
    %c0_29 = arith.constant 0 : index
    %c0_30 = arith.constant 0 : index
    %41 = vector.load %arg8[%c0_27, %c0_28, %c0_29, %c0_30] : memref<2x4x32x8xf32, #tpu.memory_space<vmem>>, vector<1x1x32x8xf32>
    %42 = vector.shape_cast %41 : vector<1x1x32x8xf32> to vector<32x8xf32>
    %cst_31 = arith.constant dense<0.000000e+00> : vector<8x8xf32>
    %43 = tpu.matmul %33, %42, %cst_31 {dimension_numbers = #tpu.dot_dimension_numbers<[1], [0], [0], [1], [0, 0, 1, 1], [], []>} : vector<8x32xf32>, vector<32x8xf32>, vector<8x8xf32> -> vector<8x8xf32>
    "tpu.trace_start"() <{level = 10 : i32, message = "qd,kd->qk"}> : () -> ()
    %cst_32 = arith.constant dense<0.000000e+00> : vector<8x8xf32>
    %44 = tpu.matmul %37, %40, %cst_32 {dimension_numbers = #tpu.dot_dimension_numbers<[1], [1], [0], [0], [0, 0, 1, 0], [], []>} : vector<8x8xf32>, vector<8x8xf32>, vector<8x8xf32> -> vector<8x8xf32>
    "tpu.trace_stop"() : () -> ()
    %45 = arith.addf %44, %11 : vector<8x8xf32>
    %cst_33 = arith.constant dense<0xFF800000> : vector<8xf32>
    %46 = vector.multi_reduction <maximumf>, %45, %cst_33 [1] : vector<8x8xf32> to vector<8xf32>
    %47 = vector.shape_cast %46 : vector<8xf32> to vector<8x1xf32>
    %48 = vector.broadcast %47 : vector<8x1xf32> to vector<8x8xf32>
    %49 = arith.subf %45, %48 : vector<8x8xf32>
    %50 = math.exp %49 : vector<8x8xf32>
    %cst_34 = arith.constant dense<0.000000e+00> : vector<8xf32>
    %51 = vector.multi_reduction <add>, %50, %cst_34 [1] : vector<8x8xf32> to vector<8xf32>
    %52 = vector.shape_cast %51 : vector<8xf32> to vector<8x1xf32>
    %53 = vector.broadcast %52 : vector<8x1xf32> to vector<8x8xf32>
    %54 = arith.divf %50, %53 : vector<8x8xf32>
    %cst_35 = arith.constant dense<0.000000e+00> : vector<8x8xf32>
    %55 = tpu.matmul %54, %43, %cst_35 {dimension_numbers = #tpu.dot_dimension_numbers<[1], [0], [0], [1], [0, 0, 1, 1], [], []>} : vector<8x8xf32>, vector<8x8xf32>, vector<8x8xf32> -> vector<8x8xf32>
    %c0_36 = arith.constant 0 : index
    %c0_37 = arith.constant 0 : index
    %c0_38 = arith.constant 0 : index
    %c0_39 = arith.constant 0 : index
    %56 = vector.load %arg9[%c0_36, %c0_37, %c0_38, %c0_39] : memref<2x4x8x32xf32, #tpu.memory_space<vmem>>, vector<1x1x8x32xf32>
    %57 = vector.shape_cast %56 : vector<1x1x8x32xf32> to vector<8x32xf32>
    %cst_40 = arith.constant dense<0.000000e+00> : vector<8x32xf32>
    %58 = tpu.matmul %55, %57, %cst_40 {dimension_numbers = #tpu.dot_dimension_numbers<[1], [0], [0], [1], [0, 0, 1, 1], [], []>} : vector<8x8xf32>, vector<8x32xf32>, vector<8x32xf32> -> vector<8x32xf32>
    %59 = arith.addf %34, %58 : vector<8x32xf32>
    %c0_41 = arith.constant 0 : index
    %c1 = arith.constant 1 : index
    %c0_42 = arith.constant 0 : index
    %c0_43 = arith.constant 0 : index
    %60 = vector.load %arg6[%c0_41, %c1, %c0_42, %c0_43] : memref<2x4x32x8xf32, #tpu.memory_space<vmem>>, vector<1x1x32x8xf32>
    %61 = vector.shape_cast %60 : vector<1x1x32x8xf32> to vector<32x8xf32>
    %cst_44 = arith.constant dense<0.000000e+00> : vector<8x8xf32>
    %62 = tpu.matmul %33, %61, %cst_44 {dimension_numbers = #tpu.dot_dimension_numbers<[1], [0], [0], [1], [0, 0, 1, 1], [], []>} : vector<8x32xf32>, vector<32x8xf32>, vector<8x8xf32> -> vector<8x8xf32>
    %c0_45 = arith.constant 0 : index
    %c1_46 = arith.constant 1 : index
    %c0_47 = arith.constant 0 : index
    %c0_48 = arith.constant 0 : index
    %63 = vector.load %arg7[%c0_45, %c1_46, %c0_47, %c0_48] : memref<2x4x32x8xf32, #tpu.memory_space<vmem>>, vector<1x1x32x8xf32>
    %64 = vector.shape_cast %63 : vector<1x1x32x8xf32> to vector<32x8xf32>
    %cst_49 = arith.constant dense<0.000000e+00> : vector<8x8xf32>
    %65 = tpu.matmul %33, %64, %cst_49 {dimension_numbers = #tpu.dot_dimension_numbers<[1], [0], [0], [1], [0, 0, 1, 1], [], []>} : vector<8x32xf32>, vector<32x8xf32>, vector<8x8xf32> -> vector<8x8xf32>
    %c0_50 = arith.constant 0 : index
    %c1_51 = arith.constant 1 : index
    %c0_52 = arith.constant 0 : index
    %c0_53 = arith.constant 0 : index
    %66 = vector.load %arg8[%c0_50, %c1_51, %c0_52, %c0_53] : memref<2x4x32x8xf32, #tpu.memory_space<vmem>>, vector<1x1x32x8xf32>
    %67 = vector.shape_cast %66 : vector<1x1x32x8xf32> to vector<32x8xf32>
    %cst_54 = arith.constant dense<0.000000e+00> : vector<8x8xf32>
    %68 = tpu.matmul %33, %67, %cst_54 {dimension_numbers = #tpu.dot_dimension_numbers<[1], [0], [0], [1], [0, 0, 1, 1], [], []>} : vector<8x32xf32>, vector<32x8xf32>, vector<8x8xf32> -> vector<8x8xf32>
    "tpu.trace_start"() <{level = 10 : i32, message = "qd,kd->qk"}> : () -> ()
    %cst_55 = arith.constant dense<0.000000e+00> : vector<8x8xf32>
    %69 = tpu.matmul %62, %65, %cst_55 {dimension_numbers = #tpu.dot_dimension_numbers<[1], [1], [0], [0], [0, 0, 1, 0], [], []>} : vector<8x8xf32>, vector<8x8xf32>, vector<8x8xf32> -> vector<8x8xf32>
    "tpu.trace_stop"() : () -> ()
    %70 = arith.addf %69, %11 : vector<8x8xf32>
    %cst_56 = arith.constant dense<0xFF800000> : vector<8xf32>
    %71 = vector.multi_reduction <maximumf>, %70, %cst_56 [1] : vector<8x8xf32> to vector<8xf32>
    %72 = vector.shape_cast %71 : vector<8xf32> to vector<8x1xf32>
    %73 = vector.broadcast %72 : vector<8x1xf32> to vector<8x8xf32>
    %74 = arith.subf %70, %73 : vector<8x8xf32>
    %75 = math.exp %74 : vector<8x8xf32>
    %cst_57 = arith.constant dense<0.000000e+00> : vector<8xf32>
    %76 = vector.multi_reduction <add>, %75, %cst_57 [1] : vector<8x8xf32> to vector<8xf32>
    %77 = vector.shape_cast %76 : vector<8xf32> to vector<8x1xf32>
    %78 = vector.broadcast %77 : vector<8x1xf32> to vector<8x8xf32>
    %79 = arith.divf %75, %78 : vector<8x8xf32>
    %cst_58 = arith.constant dense<0.000000e+00> : vector<8x8xf32>
    %80 = tpu.matmul %79, %68, %cst_58 {dimension_numbers = #tpu.dot_dimension_numbers<[1], [0], [0], [1], [0, 0, 1, 1], [], []>} : vector<8x8xf32>, vector<8x8xf32>, vector<8x8xf32> -> vector<8x8xf32>
    %c0_59 = arith.constant 0 : index
    %c1_60 = arith.constant 1 : index
    %c0_61 = arith.constant 0 : index
    %c0_62 = arith.constant 0 : index
    %81 = vector.load %arg9[%c0_59, %c1_60, %c0_61, %c0_62] : memref<2x4x8x32xf32, #tpu.memory_space<vmem>>, vector<1x1x8x32xf32>
    %82 = vector.shape_cast %81 : vector<1x1x8x32xf32> to vector<8x32xf32>
    %cst_63 = arith.constant dense<0.000000e+00> : vector<8x32xf32>
    %83 = tpu.matmul %80, %82, %cst_63 {dimension_numbers = #tpu.dot_dimension_numbers<[1], [0], [0], [1], [0, 0, 1, 1], [], []>} : vector<8x8xf32>, vector<8x32xf32>, vector<8x32xf32> -> vector<8x32xf32>
    %84 = arith.addf %59, %83 : vector<8x32xf32>
    %c0_64 = arith.constant 0 : index
    %c2 = arith.constant 2 : index
    %c0_65 = arith.constant 0 : index
    %c0_66 = arith.constant 0 : index
    %85 = vector.load %arg6[%c0_64, %c2, %c0_65, %c0_66] : memref<2x4x32x8xf32, #tpu.memory_space<vmem>>, vector<1x1x32x8xf32>
    %86 = vector.shape_cast %85 : vector<1x1x32x8xf32> to vector<32x8xf32>
    %cst_67 = arith.constant dense<0.000000e+00> : vector<8x8xf32>
    %87 = tpu.matmul %33, %86, %cst_67 {dimension_numbers = #tpu.dot_dimension_numbers<[1], [0], [0], [1], [0, 0, 1, 1], [], []>} : vector<8x32xf32>, vector<32x8xf32>, vector<8x8xf32> -> vector<8x8xf32>
    %c0_68 = arith.constant 0 : index
    %c2_69 = arith.constant 2 : index
    %c0_70 = arith.constant 0 : index
    %c0_71 = arith.constant 0 : index
    %88 = vector.load %arg7[%c0_68, %c2_69, %c0_70, %c0_71] : memref<2x4x32x8xf32, #tpu.memory_space<vmem>>, vector<1x1x32x8xf32>
    %89 = vector.shape_cast %88 : vector<1x1x32x8xf32> to vector<32x8xf32>
    %cst_72 = arith.constant dense<0.000000e+00> : vector<8x8xf32>
    %90 = tpu.matmul %33, %89, %cst_72 {dimension_numbers = #tpu.dot_dimension_numbers<[1], [0], [0], [1], [0, 0, 1, 1], [], []>} : vector<8x32xf32>, vector<32x8xf32>, vector<8x8xf32> -> vector<8x8xf32>
    %c0_73 = arith.constant 0 : index
    %c2_74 = arith.constant 2 : index
    %c0_75 = arith.constant 0 : index
    %c0_76 = arith.constant 0 : index
    %91 = vector.load %arg8[%c0_73, %c2_74, %c0_75, %c0_76] : memref<2x4x32x8xf32, #tpu.memory_space<vmem>>, vector<1x1x32x8xf32>
    %92 = vector.shape_cast %91 : vector<1x1x32x8xf32> to vector<32x8xf32>
    %cst_77 = arith.constant dense<0.000000e+00> : vector<8x8xf32>
    %93 = tpu.matmul %33, %92, %cst_77 {dimension_numbers = #tpu.dot_dimension_numbers<[1], [0], [0], [1], [0, 0, 1, 1], [], []>} : vector<8x32xf32>, vector<32x8xf32>, vector<8x8xf32> -> vector<8x8xf32>
    "tpu.trace_start"() <{level = 10 : i32, message = "qd,kd->qk"}> : () -> ()
    %cst_78 = arith.constant dense<0.000000e+00> : vector<8x8xf32>
    %94 = tpu.matmul %87, %90, %cst_78 {dimension_numbers = #tpu.dot_dimension_numbers<[1], [1], [0], [0], [0, 0, 1, 0], [], []>} : vector<8x8xf32>, vector<8x8xf32>, vector<8x8xf32> -> vector<8x8xf32>
    "tpu.trace_stop"() : () -> ()
    %95 = arith.addf %94, %11 : vector<8x8xf32>
    %cst_79 = arith.constant dense<0xFF800000> : vector<8xf32>
    %96 = vector.multi_reduction <maximumf>, %95, %cst_79 [1] : vector<8x8xf32> to vector<8xf32>
    %97 = vector.shape_cast %96 : vector<8xf32> to vector<8x1xf32>
    %98 = vector.broadcast %97 : vector<8x1xf32> to vector<8x8xf32>
    %99 = arith.subf %95, %98 : vector<8x8xf32>
    %100 = math.exp %99 : vector<8x8xf32>
    %cst_80 = arith.constant dense<0.000000e+00> : vector<8xf32>
    %101 = vector.multi_reduction <add>, %100, %cst_80 [1] : vector<8x8xf32> to vector<8xf32>
    %102 = vector.shape_cast %101 : vector<8xf32> to vector<8x1xf32>
    %103 = vector.broadcast %102 : vector<8x1xf32> to vector<8x8xf32>
    %104 = arith.divf %100, %103 : vector<8x8xf32>
    %cst_81 = arith.constant dense<0.000000e+00> : vector<8x8xf32>
    %105 = tpu.matmul %104, %93, %cst_81 {dimension_numbers = #tpu.dot_dimension_numbers<[1], [0], [0], [1], [0, 0, 1, 1], [], []>} : vector<8x8xf32>, vector<8x8xf32>, vector<8x8xf32> -> vector<8x8xf32>
    %c0_82 = arith.constant 0 : index
    %c2_83 = arith.constant 2 : index
    %c0_84 = arith.constant 0 : index
    %c0_85 = arith.constant 0 : index
    %106 = vector.load %arg9[%c0_82, %c2_83, %c0_84, %c0_85] : memref<2x4x8x32xf32, #tpu.memory_space<vmem>>, vector<1x1x8x32xf32>
    %107 = vector.shape_cast %106 : vector<1x1x8x32xf32> to vector<8x32xf32>
    %cst_86 = arith.constant dense<0.000000e+00> : vector<8x32xf32>
    %108 = tpu.matmul %105, %107, %cst_86 {dimension_numbers = #tpu.dot_dimension_numbers<[1], [0], [0], [1], [0, 0, 1, 1], [], []>} : vector<8x8xf32>, vector<8x32xf32>, vector<8x32xf32> -> vector<8x32xf32>
    %109 = arith.addf %84, %108 : vector<8x32xf32>
    %c0_87 = arith.constant 0 : index
    %c3 = arith.constant 3 : index
    %c0_88 = arith.constant 0 : index
    %c0_89 = arith.constant 0 : index
    %110 = vector.load %arg6[%c0_87, %c3, %c0_88, %c0_89] : memref<2x4x32x8xf32, #tpu.memory_space<vmem>>, vector<1x1x32x8xf32>
    %111 = vector.shape_cast %110 : vector<1x1x32x8xf32> to vector<32x8xf32>
    %cst_90 = arith.constant dense<0.000000e+00> : vector<8x8xf32>
    %112 = tpu.matmul %33, %111, %cst_90 {dimension_numbers = #tpu.dot_dimension_numbers<[1], [0], [0], [1], [0, 0, 1, 1], [], []>} : vector<8x32xf32>, vector<32x8xf32>, vector<8x8xf32> -> vector<8x8xf32>
    %c0_91 = arith.constant 0 : index
    %c3_92 = arith.constant 3 : index
    %c0_93 = arith.constant 0 : index
    %c0_94 = arith.constant 0 : index
    %113 = vector.load %arg7[%c0_91, %c3_92, %c0_93, %c0_94] : memref<2x4x32x8xf32, #tpu.memory_space<vmem>>, vector<1x1x32x8xf32>
    %114 = vector.shape_cast %113 : vector<1x1x32x8xf32> to vector<32x8xf32>
    %cst_95 = arith.constant dense<0.000000e+00> : vector<8x8xf32>
    %115 = tpu.matmul %33, %114, %cst_95 {dimension_numbers = #tpu.dot_dimension_numbers<[1], [0], [0], [1], [0, 0, 1, 1], [], []>} : vector<8x32xf32>, vector<32x8xf32>, vector<8x8xf32> -> vector<8x8xf32>
    %c0_96 = arith.constant 0 : index
    %c3_97 = arith.constant 3 : index
    %c0_98 = arith.constant 0 : index
    %c0_99 = arith.constant 0 : index
    %116 = vector.load %arg8[%c0_96, %c3_97, %c0_98, %c0_99] : memref<2x4x32x8xf32, #tpu.memory_space<vmem>>, vector<1x1x32x8xf32>
    %117 = vector.shape_cast %116 : vector<1x1x32x8xf32> to vector<32x8xf32>
    %cst_100 = arith.constant dense<0.000000e+00> : vector<8x8xf32>
    %118 = tpu.matmul %33, %117, %cst_100 {dimension_numbers = #tpu.dot_dimension_numbers<[1], [0], [0], [1], [0, 0, 1, 1], [], []>} : vector<8x32xf32>, vector<32x8xf32>, vector<8x8xf32> -> vector<8x8xf32>
    "tpu.trace_start"() <{level = 10 : i32, message = "qd,kd->qk"}> : () -> ()
    %cst_101 = arith.constant dense<0.000000e+00> : vector<8x8xf32>
    %119 = tpu.matmul %112, %115, %cst_101 {dimension_numbers = #tpu.dot_dimension_numbers<[1], [1], [0], [0], [0, 0, 1, 0], [], []>} : vector<8x8xf32>, vector<8x8xf32>, vector<8x8xf32> -> vector<8x8xf32>
    "tpu.trace_stop"() : () -> ()
    %120 = arith.addf %119, %11 : vector<8x8xf32>
    %cst_102 = arith.constant dense<0xFF800000> : vector<8xf32>
    %121 = vector.multi_reduction <maximumf>, %120, %cst_102 [1] : vector<8x8xf32> to vector<8xf32>
    %122 = vector.shape_cast %121 : vector<8xf32> to vector<8x1xf32>
    %123 = vector.broadcast %122 : vector<8x1xf32> to vector<8x8xf32>
    %124 = arith.subf %120, %123 : vector<8x8xf32>
    %125 = math.exp %124 : vector<8x8xf32>
    %cst_103 = arith.constant dense<0.000000e+00> : vector<8xf32>
    %126 = vector.multi_reduction <add>, %125, %cst_103 [1] : vector<8x8xf32> to vector<8xf32>
    %127 = vector.shape_cast %126 : vector<8xf32> to vector<8x1xf32>
    %128 = vector.broadcast %127 : vector<8x1xf32> to vector<8x8xf32>
    %129 = arith.divf %125, %128 : vector<8x8xf32>
    %cst_104 = arith.constant dense<0.000000e+00> : vector<8x8xf32>
    %130 = tpu.matmul %129, %118, %cst_104 {dimension_numbers = #tpu.dot_dimension_numbers<[1], [0], [0], [1], [0, 0, 1, 1], [], []>} : vector<8x8xf32>, vector<8x8xf32>, vector<8x8xf32> -> vector<8x8xf32>
    %c0_105 = arith.constant 0 : index
    %c3_106 = arith.constant 3 : index
    %c0_107 = arith.constant 0 : index
    %c0_108 = arith.constant 0 : index
    %131 = vector.load %arg9[%c0_105, %c3_106, %c0_107, %c0_108] : memref<2x4x8x32xf32, #tpu.memory_space<vmem>>, vector<1x1x8x32xf32>
    %132 = vector.shape_cast %131 : vector<1x1x8x32xf32> to vector<8x32xf32>
    %cst_109 = arith.constant dense<0.000000e+00> : vector<8x32xf32>
    %133 = tpu.matmul %130, %132, %cst_109 {dimension_numbers = #tpu.dot_dimension_numbers<[1], [0], [0], [1], [0, 0, 1, 1], [], []>} : vector<8x8xf32>, vector<8x32xf32>, vector<8x32xf32> -> vector<8x32xf32>
    %134 = arith.addf %109, %133 : vector<8x32xf32>
    %135 = arith.addf %5, %134 : vector<8x32xf32>
    %c0_110 = arith.constant 0 : index
    %c0_111 = arith.constant 0 : index
    %c0_112 = arith.constant 0 : index
    %136 = vector.load %arg10[%c0_110, %c0_111, %c0_112] : memref<2x1x32xf32, #tpu.memory_space<vmem>>, vector<1x1x32xf32>
    %137 = vector.shape_cast %136 : vector<1x1x32xf32> to vector<1x32xf32>
    %cst_113 = arith.constant dense<0.000000e+00> : vector<8xf32>
    %138 = vector.multi_reduction <add>, %135, %cst_113 [1] : vector<8x32xf32> to vector<8xf32>
    %139 = vector.shape_cast %138 : vector<8xf32> to vector<8x1xf32>
    %cst_114 = arith.constant 3.200000e+01 : f32
    %140 = vector.broadcast %cst_114 : f32 to vector<8x1xf32>
    %141 = arith.divf %139, %140 : vector<8x1xf32>
    %142 = vector.broadcast %141 : vector<8x1xf32> to vector<8x32xf32>
    %143 = arith.subf %135, %142 : vector<8x32xf32>
    %144 = arith.mulf %143, %143 : vector<8x32xf32>
    %cst_115 = arith.constant dense<0.000000e+00> : vector<8xf32>
    %145 = vector.multi_reduction <add>, %144, %cst_115 [1] : vector<8x32xf32> to vector<8xf32>
    %146 = vector.shape_cast %145 : vector<8xf32> to vector<8x1xf32>
    %cst_116 = arith.constant 3.200000e+01 : f32
    %147 = vector.broadcast %cst_116 : f32 to vector<8x1xf32>
    %148 = arith.divf %146, %147 : vector<8x1xf32>
    %149 = vector.broadcast %141 : vector<8x1xf32> to vector<8x32xf32>
    %150 = arith.subf %135, %149 : vector<8x32xf32>
    %cst_117 = arith.constant 9.99999974E-6 : f32
    %151 = vector.broadcast %cst_117 : f32 to vector<8x1xf32>
    %152 = arith.addf %148, %151 : vector<8x1xf32>
    %153 = math.rsqrt %152 : vector<8x1xf32>
    %154 = vector.broadcast %153 : vector<8x1xf32> to vector<8x32xf32>
    %155 = arith.mulf %150, %154 : vector<8x32xf32>
    %156 = vector.broadcast %137 : vector<1x32xf32> to vector<8x32xf32>
    %157 = arith.mulf %155, %156 : vector<8x32xf32>
    %c0_118 = arith.constant 0 : index
    %c0_119 = arith.constant 0 : index
    %c0_120 = arith.constant 0 : index
    %158 = vector.load %arg11[%c0_118, %c0_119, %c0_120] : memref<2x32x64xf32, #tpu.memory_space<vmem>>, vector<1x32x64xf32>
    %159 = vector.shape_cast %158 : vector<1x32x64xf32> to vector<32x64xf32>
    %cst_121 = arith.constant dense<0.000000e+00> : vector<8x64xf32>
    %160 = tpu.matmul %157, %159, %cst_121 {dimension_numbers = #tpu.dot_dimension_numbers<[1], [0], [0], [1], [0, 0, 1, 1], [], []>} : vector<8x32xf32>, vector<32x64xf32>, vector<8x64xf32> -> vector<8x64xf32>
    %161 = arith.mulf %160, %160 : vector<8x64xf32>
    %162 = arith.mulf %160, %161 : vector<8x64xf32>
    %cst_122 = arith.constant 4.471500e-02 : f32
    %163 = vector.broadcast %cst_122 : f32 to vector<8x64xf32>
    %164 = arith.mulf %163, %162 : vector<8x64xf32>
    %165 = arith.addf %160, %164 : vector<8x64xf32>
    %cst_123 = arith.constant 0.797884583 : f32
    %166 = vector.broadcast %cst_123 : f32 to vector<8x64xf32>
    %167 = arith.mulf %166, %165 : vector<8x64xf32>
    %168 = math.tanh %167 : vector<8x64xf32>
    %cst_124 = arith.constant 1.000000e+00 : f32
    %169 = vector.broadcast %cst_124 : f32 to vector<8x64xf32>
    %170 = arith.addf %169, %168 : vector<8x64xf32>
    %cst_125 = arith.constant 5.000000e-01 : f32
    %171 = vector.broadcast %cst_125 : f32 to vector<8x64xf32>
    %172 = arith.mulf %171, %170 : vector<8x64xf32>
    %173 = arith.mulf %160, %172 : vector<8x64xf32>
    %c0_126 = arith.constant 0 : index
    %c0_127 = arith.constant 0 : index
    %c0_128 = arith.constant 0 : index
    %174 = vector.load %arg12[%c0_126, %c0_127, %c0_128] : memref<2x64x32xf32, #tpu.memory_space<vmem>>, vector<1x64x32xf32>
    %175 = vector.shape_cast %174 : vector<1x64x32xf32> to vector<64x32xf32>
    %cst_129 = arith.constant dense<0.000000e+00> : vector<8x32xf32>
    %176 = tpu.matmul %173, %175, %cst_129 {dimension_numbers = #tpu.dot_dimension_numbers<[1], [0], [0], [1], [0, 0, 1, 1], [], []>} : vector<8x64xf32>, vector<64x32xf32>, vector<8x32xf32> -> vector<8x32xf32>
    %177 = arith.addf %135, %176 : vector<8x32xf32>
    %c1_130 = arith.constant 1 : index
    %c0_131 = arith.constant 0 : index
    %c0_132 = arith.constant 0 : index
    %178 = vector.load %arg5[%c1_130, %c0_131, %c0_132] : memref<2x1x32xf32, #tpu.memory_space<vmem>>, vector<1x1x32xf32>
    %179 = vector.shape_cast %178 : vector<1x1x32xf32> to vector<1x32xf32>
    %cst_133 = arith.constant dense<0.000000e+00> : vector<8xf32>
    %180 = vector.multi_reduction <add>, %177, %cst_133 [1] : vector<8x32xf32> to vector<8xf32>
    %181 = vector.shape_cast %180 : vector<8xf32> to vector<8x1xf32>
    %cst_134 = arith.constant 3.200000e+01 : f32
    %182 = vector.broadcast %cst_134 : f32 to vector<8x1xf32>
    %183 = arith.divf %181, %182 : vector<8x1xf32>
    %184 = vector.broadcast %183 : vector<8x1xf32> to vector<8x32xf32>
    %185 = arith.subf %177, %184 : vector<8x32xf32>
    %186 = arith.mulf %185, %185 : vector<8x32xf32>
    %cst_135 = arith.constant dense<0.000000e+00> : vector<8xf32>
    %187 = vector.multi_reduction <add>, %186, %cst_135 [1] : vector<8x32xf32> to vector<8xf32>
    %188 = vector.shape_cast %187 : vector<8xf32> to vector<8x1xf32>
    %cst_136 = arith.constant 3.200000e+01 : f32
    %189 = vector.broadcast %cst_136 : f32 to vector<8x1xf32>
    %190 = arith.divf %188, %189 : vector<8x1xf32>
    %191 = vector.broadcast %183 : vector<8x1xf32> to vector<8x32xf32>
    %192 = arith.subf %177, %191 : vector<8x32xf32>
    %cst_137 = arith.constant 9.99999974E-6 : f32
    %193 = vector.broadcast %cst_137 : f32 to vector<8x1xf32>
    %194 = arith.addf %190, %193 : vector<8x1xf32>
    %195 = math.rsqrt %194 : vector<8x1xf32>
    %196 = vector.broadcast %195 : vector<8x1xf32> to vector<8x32xf32>
    %197 = arith.mulf %192, %196 : vector<8x32xf32>
    %198 = vector.broadcast %179 : vector<1x32xf32> to vector<8x32xf32>
    %199 = arith.mulf %197, %198 : vector<8x32xf32>
    %cst_138 = arith.constant 0.000000e+00 : f32
    %200 = vector.broadcast %cst_138 : f32 to vector<8x32xf32>
    %c1_139 = arith.constant 1 : index
    %c0_140 = arith.constant 0 : index
    %c0_141 = arith.constant 0 : index
    %c0_142 = arith.constant 0 : index
    %201 = vector.load %arg6[%c1_139, %c0_140, %c0_141, %c0_142] : memref<2x4x32x8xf32, #tpu.memory_space<vmem>>, vector<1x1x32x8xf32>
    %202 = vector.shape_cast %201 : vector<1x1x32x8xf32> to vector<32x8xf32>
    %cst_143 = arith.constant dense<0.000000e+00> : vector<8x8xf32>
    %203 = tpu.matmul %199, %202, %cst_143 {dimension_numbers = #tpu.dot_dimension_numbers<[1], [0], [0], [1], [0, 0, 1, 1], [], []>} : vector<8x32xf32>, vector<32x8xf32>, vector<8x8xf32> -> vector<8x8xf32>
    %c1_144 = arith.constant 1 : index
    %c0_145 = arith.constant 0 : index
    %c0_146 = arith.constant 0 : index
    %c0_147 = arith.constant 0 : index
    %204 = vector.load %arg7[%c1_144, %c0_145, %c0_146, %c0_147] : memref<2x4x32x8xf32, #tpu.memory_space<vmem>>, vector<1x1x32x8xf32>
    %205 = vector.shape_cast %204 : vector<1x1x32x8xf32> to vector<32x8xf32>
    %cst_148 = arith.constant dense<0.000000e+00> : vector<8x8xf32>
    %206 = tpu.matmul %199, %205, %cst_148 {dimension_numbers = #tpu.dot_dimension_numbers<[1], [0], [0], [1], [0, 0, 1, 1], [], []>} : vector<8x32xf32>, vector<32x8xf32>, vector<8x8xf32> -> vector<8x8xf32>
    %c1_149 = arith.constant 1 : index
    %c0_150 = arith.constant 0 : index
    %c0_151 = arith.constant 0 : index
    %c0_152 = arith.constant 0 : index
    %207 = vector.load %arg8[%c1_149, %c0_150, %c0_151, %c0_152] : memref<2x4x32x8xf32, #tpu.memory_space<vmem>>, vector<1x1x32x8xf32>
    %208 = vector.shape_cast %207 : vector<1x1x32x8xf32> to vector<32x8xf32>
    %cst_153 = arith.constant dense<0.000000e+00> : vector<8x8xf32>
    %209 = tpu.matmul %199, %208, %cst_153 {dimension_numbers = #tpu.dot_dimension_numbers<[1], [0], [0], [1], [0, 0, 1, 1], [], []>} : vector<8x32xf32>, vector<32x8xf32>, vector<8x8xf32> -> vector<8x8xf32>
    "tpu.trace_start"() <{level = 10 : i32, message = "qd,kd->qk"}> : () -> ()
    %cst_154 = arith.constant dense<0.000000e+00> : vector<8x8xf32>
    %210 = tpu.matmul %203, %206, %cst_154 {dimension_numbers = #tpu.dot_dimension_numbers<[1], [1], [0], [0], [0, 0, 1, 0], [], []>} : vector<8x8xf32>, vector<8x8xf32>, vector<8x8xf32> -> vector<8x8xf32>
    "tpu.trace_stop"() : () -> ()
    %211 = arith.addf %210, %11 : vector<8x8xf32>
    %cst_155 = arith.constant dense<0xFF800000> : vector<8xf32>
    %212 = vector.multi_reduction <maximumf>, %211, %cst_155 [1] : vector<8x8xf32> to vector<8xf32>
    %213 = vector.shape_cast %212 : vector<8xf32> to vector<8x1xf32>
    %214 = vector.broadcast %213 : vector<8x1xf32> to vector<8x8xf32>
    %215 = arith.subf %211, %214 : vector<8x8xf32>
    %216 = math.exp %215 : vector<8x8xf32>
    %cst_156 = arith.constant dense<0.000000e+00> : vector<8xf32>
    %217 = vector.multi_reduction <add>, %216, %cst_156 [1] : vector<8x8xf32> to vector<8xf32>
    %218 = vector.shape_cast %217 : vector<8xf32> to vector<8x1xf32>
    %219 = vector.broadcast %218 : vector<8x1xf32> to vector<8x8xf32>
    %220 = arith.divf %216, %219 : vector<8x8xf32>
    %cst_157 = arith.constant dense<0.000000e+00> : vector<8x8xf32>
    %221 = tpu.matmul %220, %209, %cst_157 {dimension_numbers = #tpu.dot_dimension_numbers<[1], [0], [0], [1], [0, 0, 1, 1], [], []>} : vector<8x8xf32>, vector<8x8xf32>, vector<8x8xf32> -> vector<8x8xf32>
    %c1_158 = arith.constant 1 : index
    %c0_159 = arith.constant 0 : index
    %c0_160 = arith.constant 0 : index
    %c0_161 = arith.constant 0 : index
    %222 = vector.load %arg9[%c1_158, %c0_159, %c0_160, %c0_161] : memref<2x4x8x32xf32, #tpu.memory_space<vmem>>, vector<1x1x8x32xf32>
    %223 = vector.shape_cast %222 : vector<1x1x8x32xf32> to vector<8x32xf32>
    %cst_162 = arith.constant dense<0.000000e+00> : vector<8x32xf32>
    %224 = tpu.matmul %221, %223, %cst_162 {dimension_numbers = #tpu.dot_dimension_numbers<[1], [0], [0], [1], [0, 0, 1, 1], [], []>} : vector<8x8xf32>, vector<8x32xf32>, vector<8x32xf32> -> vector<8x32xf32>
    %225 = arith.addf %200, %224 : vector<8x32xf32>
    %c1_163 = arith.constant 1 : index
    %c1_164 = arith.constant 1 : index
    %c0_165 = arith.constant 0 : index
    %c0_166 = arith.constant 0 : index
    %226 = vector.load %arg6[%c1_163, %c1_164, %c0_165, %c0_166] : memref<2x4x32x8xf32, #tpu.memory_space<vmem>>, vector<1x1x32x8xf32>
    %227 = vector.shape_cast %226 : vector<1x1x32x8xf32> to vector<32x8xf32>
    %cst_167 = arith.constant dense<0.000000e+00> : vector<8x8xf32>
    %228 = tpu.matmul %199, %227, %cst_167 {dimension_numbers = #tpu.dot_dimension_numbers<[1], [0], [0], [1], [0, 0, 1, 1], [], []>} : vector<8x32xf32>, vector<32x8xf32>, vector<8x8xf32> -> vector<8x8xf32>
    %c1_168 = arith.constant 1 : index
    %c1_169 = arith.constant 1 : index
    %c0_170 = arith.constant 0 : index
    %c0_171 = arith.constant 0 : index
    %229 = vector.load %arg7[%c1_168, %c1_169, %c0_170, %c0_171] : memref<2x4x32x8xf32, #tpu.memory_space<vmem>>, vector<1x1x32x8xf32>
    %230 = vector.shape_cast %229 : vector<1x1x32x8xf32> to vector<32x8xf32>
    %cst_172 = arith.constant dense<0.000000e+00> : vector<8x8xf32>
    %231 = tpu.matmul %199, %230, %cst_172 {dimension_numbers = #tpu.dot_dimension_numbers<[1], [0], [0], [1], [0, 0, 1, 1], [], []>} : vector<8x32xf32>, vector<32x8xf32>, vector<8x8xf32> -> vector<8x8xf32>
    %c1_173 = arith.constant 1 : index
    %c1_174 = arith.constant 1 : index
    %c0_175 = arith.constant 0 : index
    %c0_176 = arith.constant 0 : index
    %232 = vector.load %arg8[%c1_173, %c1_174, %c0_175, %c0_176] : memref<2x4x32x8xf32, #tpu.memory_space<vmem>>, vector<1x1x32x8xf32>
    %233 = vector.shape_cast %232 : vector<1x1x32x8xf32> to vector<32x8xf32>
    %cst_177 = arith.constant dense<0.000000e+00> : vector<8x8xf32>
    %234 = tpu.matmul %199, %233, %cst_177 {dimension_numbers = #tpu.dot_dimension_numbers<[1], [0], [0], [1], [0, 0, 1, 1], [], []>} : vector<8x32xf32>, vector<32x8xf32>, vector<8x8xf32> -> vector<8x8xf32>
    "tpu.trace_start"() <{level = 10 : i32, message = "qd,kd->qk"}> : () -> ()
    %cst_178 = arith.constant dense<0.000000e+00> : vector<8x8xf32>
    %235 = tpu.matmul %228, %231, %cst_178 {dimension_numbers = #tpu.dot_dimension_numbers<[1], [1], [0], [0], [0, 0, 1, 0], [], []>} : vector<8x8xf32>, vector<8x8xf32>, vector<8x8xf32> -> vector<8x8xf32>
    "tpu.trace_stop"() : () -> ()
    %236 = arith.addf %235, %11 : vector<8x8xf32>
    %cst_179 = arith.constant dense<0xFF800000> : vector<8xf32>
    %237 = vector.multi_reduction <maximumf>, %236, %cst_179 [1] : vector<8x8xf32> to vector<8xf32>
    %238 = vector.shape_cast %237 : vector<8xf32> to vector<8x1xf32>
    %239 = vector.broadcast %238 : vector<8x1xf32> to vector<8x8xf32>
    %240 = arith.subf %236, %239 : vector<8x8xf32>
    %241 = math.exp %240 : vector<8x8xf32>
    %cst_180 = arith.constant dense<0.000000e+00> : vector<8xf32>
    %242 = vector.multi_reduction <add>, %241, %cst_180 [1] : vector<8x8xf32> to vector<8xf32>
    %243 = vector.shape_cast %242 : vector<8xf32> to vector<8x1xf32>
    %244 = vector.broadcast %243 : vector<8x1xf32> to vector<8x8xf32>
    %245 = arith.divf %241, %244 : vector<8x8xf32>
    %cst_181 = arith.constant dense<0.000000e+00> : vector<8x8xf32>
    %246 = tpu.matmul %245, %234, %cst_181 {dimension_numbers = #tpu.dot_dimension_numbers<[1], [0], [0], [1], [0, 0, 1, 1], [], []>} : vector<8x8xf32>, vector<8x8xf32>, vector<8x8xf32> -> vector<8x8xf32>
    %c1_182 = arith.constant 1 : index
    %c1_183 = arith.constant 1 : index
    %c0_184 = arith.constant 0 : index
    %c0_185 = arith.constant 0 : index
    %247 = vector.load %arg9[%c1_182, %c1_183, %c0_184, %c0_185] : memref<2x4x8x32xf32, #tpu.memory_space<vmem>>, vector<1x1x8x32xf32>
    %248 = vector.shape_cast %247 : vector<1x1x8x32xf32> to vector<8x32xf32>
    %cst_186 = arith.constant dense<0.000000e+00> : vector<8x32xf32>
    %249 = tpu.matmul %246, %248, %cst_186 {dimension_numbers = #tpu.dot_dimension_numbers<[1], [0], [0], [1], [0, 0, 1, 1], [], []>} : vector<8x8xf32>, vector<8x32xf32>, vector<8x32xf32> -> vector<8x32xf32>
    %250 = arith.addf %225, %249 : vector<8x32xf32>
    %c1_187 = arith.constant 1 : index
    %c2_188 = arith.constant 2 : index
    %c0_189 = arith.constant 0 : index
    %c0_190 = arith.constant 0 : index
    %251 = vector.load %arg6[%c1_187, %c2_188, %c0_189, %c0_190] : memref<2x4x32x8xf32, #tpu.memory_space<vmem>>, vector<1x1x32x8xf32>
    %252 = vector.shape_cast %251 : vector<1x1x32x8xf32> to vector<32x8xf32>
    %cst_191 = arith.constant dense<0.000000e+00> : vector<8x8xf32>
    %253 = tpu.matmul %199, %252, %cst_191 {dimension_numbers = #tpu.dot_dimension_numbers<[1], [0], [0], [1], [0, 0, 1, 1], [], []>} : vector<8x32xf32>, vector<32x8xf32>, vector<8x8xf32> -> vector<8x8xf32>
    %c1_192 = arith.constant 1 : index
    %c2_193 = arith.constant 2 : index
    %c0_194 = arith.constant 0 : index
    %c0_195 = arith.constant 0 : index
    %254 = vector.load %arg7[%c1_192, %c2_193, %c0_194, %c0_195] : memref<2x4x32x8xf32, #tpu.memory_space<vmem>>, vector<1x1x32x8xf32>
    %255 = vector.shape_cast %254 : vector<1x1x32x8xf32> to vector<32x8xf32>
    %cst_196 = arith.constant dense<0.000000e+00> : vector<8x8xf32>
    %256 = tpu.matmul %199, %255, %cst_196 {dimension_numbers = #tpu.dot_dimension_numbers<[1], [0], [0], [1], [0, 0, 1, 1], [], []>} : vector<8x32xf32>, vector<32x8xf32>, vector<8x8xf32> -> vector<8x8xf32>
    %c1_197 = arith.constant 1 : index
    %c2_198 = arith.constant 2 : index
    %c0_199 = arith.constant 0 : index
    %c0_200 = arith.constant 0 : index
    %257 = vector.load %arg8[%c1_197, %c2_198, %c0_199, %c0_200] : memref<2x4x32x8xf32, #tpu.memory_space<vmem>>, vector<1x1x32x8xf32>
    %258 = vector.shape_cast %257 : vector<1x1x32x8xf32> to vector<32x8xf32>
    %cst_201 = arith.constant dense<0.000000e+00> : vector<8x8xf32>
    %259 = tpu.matmul %199, %258, %cst_201 {dimension_numbers = #tpu.dot_dimension_numbers<[1], [0], [0], [1], [0, 0, 1, 1], [], []>} : vector<8x32xf32>, vector<32x8xf32>, vector<8x8xf32> -> vector<8x8xf32>
    "tpu.trace_start"() <{level = 10 : i32, message = "qd,kd->qk"}> : () -> ()
    %cst_202 = arith.constant dense<0.000000e+00> : vector<8x8xf32>
    %260 = tpu.matmul %253, %256, %cst_202 {dimension_numbers = #tpu.dot_dimension_numbers<[1], [1], [0], [0], [0, 0, 1, 0], [], []>} : vector<8x8xf32>, vector<8x8xf32>, vector<8x8xf32> -> vector<8x8xf32>
    "tpu.trace_stop"() : () -> ()
    %261 = arith.addf %260, %11 : vector<8x8xf32>
    %cst_203 = arith.constant dense<0xFF800000> : vector<8xf32>
    %262 = vector.multi_reduction <maximumf>, %261, %cst_203 [1] : vector<8x8xf32> to vector<8xf32>
    %263 = vector.shape_cast %262 : vector<8xf32> to vector<8x1xf32>
    %264 = vector.broadcast %263 : vector<8x1xf32> to vector<8x8xf32>
    %265 = arith.subf %261, %264 : vector<8x8xf32>
    %266 = math.exp %265 : vector<8x8xf32>
    %cst_204 = arith.constant dense<0.000000e+00> : vector<8xf32>
    %267 = vector.multi_reduction <add>, %266, %cst_204 [1] : vector<8x8xf32> to vector<8xf32>
    %268 = vector.shape_cast %267 : vector<8xf32> to vector<8x1xf32>
    %269 = vector.broadcast %268 : vector<8x1xf32> to vector<8x8xf32>
    %270 = arith.divf %266, %269 : vector<8x8xf32>
    %cst_205 = arith.constant dense<0.000000e+00> : vector<8x8xf32>
    %271 = tpu.matmul %270, %259, %cst_205 {dimension_numbers = #tpu.dot_dimension_numbers<[1], [0], [0], [1], [0, 0, 1, 1], [], []>} : vector<8x8xf32>, vector<8x8xf32>, vector<8x8xf32> -> vector<8x8xf32>
    %c1_206 = arith.constant 1 : index
    %c2_207 = arith.constant 2 : index
    %c0_208 = arith.constant 0 : index
    %c0_209 = arith.constant 0 : index
    %272 = vector.load %arg9[%c1_206, %c2_207, %c0_208, %c0_209] : memref<2x4x8x32xf32, #tpu.memory_space<vmem>>, vector<1x1x8x32xf32>
    %273 = vector.shape_cast %272 : vector<1x1x8x32xf32> to vector<8x32xf32>
    %cst_210 = arith.constant dense<0.000000e+00> : vector<8x32xf32>
    %274 = tpu.matmul %271, %273, %cst_210 {dimension_numbers = #tpu.dot_dimension_numbers<[1], [0], [0], [1], [0, 0, 1, 1], [], []>} : vector<8x8xf32>, vector<8x32xf32>, vector<8x32xf32> -> vector<8x32xf32>
    %275 = arith.addf %250, %274 : vector<8x32xf32>
    %c1_211 = arith.constant 1 : index
    %c3_212 = arith.constant 3 : index
    %c0_213 = arith.constant 0 : index
    %c0_214 = arith.constant 0 : index
    %276 = vector.load %arg6[%c1_211, %c3_212, %c0_213, %c0_214] : memref<2x4x32x8xf32, #tpu.memory_space<vmem>>, vector<1x1x32x8xf32>
    %277 = vector.shape_cast %276 : vector<1x1x32x8xf32> to vector<32x8xf32>
    %cst_215 = arith.constant dense<0.000000e+00> : vector<8x8xf32>
    %278 = tpu.matmul %199, %277, %cst_215 {dimension_numbers = #tpu.dot_dimension_numbers<[1], [0], [0], [1], [0, 0, 1, 1], [], []>} : vector<8x32xf32>, vector<32x8xf32>, vector<8x8xf32> -> vector<8x8xf32>
    %c1_216 = arith.constant 1 : index
    %c3_217 = arith.constant 3 : index
    %c0_218 = arith.constant 0 : index
    %c0_219 = arith.constant 0 : index
    %279 = vector.load %arg7[%c1_216, %c3_217, %c0_218, %c0_219] : memref<2x4x32x8xf32, #tpu.memory_space<vmem>>, vector<1x1x32x8xf32>
    %280 = vector.shape_cast %279 : vector<1x1x32x8xf32> to vector<32x8xf32>
    %cst_220 = arith.constant dense<0.000000e+00> : vector<8x8xf32>
    %281 = tpu.matmul %199, %280, %cst_220 {dimension_numbers = #tpu.dot_dimension_numbers<[1], [0], [0], [1], [0, 0, 1, 1], [], []>} : vector<8x32xf32>, vector<32x8xf32>, vector<8x8xf32> -> vector<8x8xf32>
    %c1_221 = arith.constant 1 : index
    %c3_222 = arith.constant 3 : index
    %c0_223 = arith.constant 0 : index
    %c0_224 = arith.constant 0 : index
    %282 = vector.load %arg8[%c1_221, %c3_222, %c0_223, %c0_224] : memref<2x4x32x8xf32, #tpu.memory_space<vmem>>, vector<1x1x32x8xf32>
    %283 = vector.shape_cast %282 : vector<1x1x32x8xf32> to vector<32x8xf32>
    %cst_225 = arith.constant dense<0.000000e+00> : vector<8x8xf32>
    %284 = tpu.matmul %199, %283, %cst_225 {dimension_numbers = #tpu.dot_dimension_numbers<[1], [0], [0], [1], [0, 0, 1, 1], [], []>} : vector<8x32xf32>, vector<32x8xf32>, vector<8x8xf32> -> vector<8x8xf32>
    "tpu.trace_start"() <{level = 10 : i32, message = "qd,kd->qk"}> : () -> ()
    %cst_226 = arith.constant dense<0.000000e+00> : vector<8x8xf32>
    %285 = tpu.matmul %278, %281, %cst_226 {dimension_numbers = #tpu.dot_dimension_numbers<[1], [1], [0], [0], [0, 0, 1, 0], [], []>} : vector<8x8xf32>, vector<8x8xf32>, vector<8x8xf32> -> vector<8x8xf32>
    "tpu.trace_stop"() : () -> ()
    %286 = arith.addf %285, %11 : vector<8x8xf32>
    %cst_227 = arith.constant dense<0xFF800000> : vector<8xf32>
    %287 = vector.multi_reduction <maximumf>, %286, %cst_227 [1] : vector<8x8xf32> to vector<8xf32>
    %288 = vector.shape_cast %287 : vector<8xf32> to vector<8x1xf32>
    %289 = vector.broadcast %288 : vector<8x1xf32> to vector<8x8xf32>
    %290 = arith.subf %286, %289 : vector<8x8xf32>
    %291 = math.exp %290 : vector<8x8xf32>
    %cst_228 = arith.constant dense<0.000000e+00> : vector<8xf32>
    %292 = vector.multi_reduction <add>, %291, %cst_228 [1] : vector<8x8xf32> to vector<8xf32>
    %293 = vector.shape_cast %292 : vector<8xf32> to vector<8x1xf32>
    %294 = vector.broadcast %293 : vector<8x1xf32> to vector<8x8xf32>
    %295 = arith.divf %291, %294 : vector<8x8xf32>
    %cst_229 = arith.constant dense<0.000000e+00> : vector<8x8xf32>
    %296 = tpu.matmul %295, %284, %cst_229 {dimension_numbers = #tpu.dot_dimension_numbers<[1], [0], [0], [1], [0, 0, 1, 1], [], []>} : vector<8x8xf32>, vector<8x8xf32>, vector<8x8xf32> -> vector<8x8xf32>
    %c1_230 = arith.constant 1 : index
    %c3_231 = arith.constant 3 : index
    %c0_232 = arith.constant 0 : index
    %c0_233 = arith.constant 0 : index
    %297 = vector.load %arg9[%c1_230, %c3_231, %c0_232, %c0_233] : memref<2x4x8x32xf32, #tpu.memory_space<vmem>>, vector<1x1x8x32xf32>
    %298 = vector.shape_cast %297 : vector<1x1x8x32xf32> to vector<8x32xf32>
    %cst_234 = arith.constant dense<0.000000e+00> : vector<8x32xf32>
    %299 = tpu.matmul %296, %298, %cst_234 {dimension_numbers = #tpu.dot_dimension_numbers<[1], [0], [0], [1], [0, 0, 1, 1], [], []>} : vector<8x8xf32>, vector<8x32xf32>, vector<8x32xf32> -> vector<8x32xf32>
    %300 = arith.addf %275, %299 : vector<8x32xf32>
    %301 = arith.addf %177, %300 : vector<8x32xf32>
    %c1_235 = arith.constant 1 : index
    %c0_236 = arith.constant 0 : index
    %c0_237 = arith.constant 0 : index
    %302 = vector.load %arg10[%c1_235, %c0_236, %c0_237] : memref<2x1x32xf32, #tpu.memory_space<vmem>>, vector<1x1x32xf32>
    %303 = vector.shape_cast %302 : vector<1x1x32xf32> to vector<1x32xf32>
    %cst_238 = arith.constant dense<0.000000e+00> : vector<8xf32>
    %304 = vector.multi_reduction <add>, %301, %cst_238 [1] : vector<8x32xf32> to vector<8xf32>
    %305 = vector.shape_cast %304 : vector<8xf32> to vector<8x1xf32>
    %cst_239 = arith.constant 3.200000e+01 : f32
    %306 = vector.broadcast %cst_239 : f32 to vector<8x1xf32>
    %307 = arith.divf %305, %306 : vector<8x1xf32>
    %308 = vector.broadcast %307 : vector<8x1xf32> to vector<8x32xf32>
    %309 = arith.subf %301, %308 : vector<8x32xf32>
    %310 = arith.mulf %309, %309 : vector<8x32xf32>
    %cst_240 = arith.constant dense<0.000000e+00> : vector<8xf32>
    %311 = vector.multi_reduction <add>, %310, %cst_240 [1] : vector<8x32xf32> to vector<8xf32>
    %312 = vector.shape_cast %311 : vector<8xf32> to vector<8x1xf32>
    %cst_241 = arith.constant 3.200000e+01 : f32
    %313 = vector.broadcast %cst_241 : f32 to vector<8x1xf32>
    %314 = arith.divf %312, %313 : vector<8x1xf32>
    %315 = vector.broadcast %307 : vector<8x1xf32> to vector<8x32xf32>
    %316 = arith.subf %301, %315 : vector<8x32xf32>
    %cst_242 = arith.constant 9.99999974E-6 : f32
    %317 = vector.broadcast %cst_242 : f32 to vector<8x1xf32>
    %318 = arith.addf %314, %317 : vector<8x1xf32>
    %319 = math.rsqrt %318 : vector<8x1xf32>
    %320 = vector.broadcast %319 : vector<8x1xf32> to vector<8x32xf32>
    %321 = arith.mulf %316, %320 : vector<8x32xf32>
    %322 = vector.broadcast %303 : vector<1x32xf32> to vector<8x32xf32>
    %323 = arith.mulf %321, %322 : vector<8x32xf32>
    %c1_243 = arith.constant 1 : index
    %c0_244 = arith.constant 0 : index
    %c0_245 = arith.constant 0 : index
    %324 = vector.load %arg11[%c1_243, %c0_244, %c0_245] : memref<2x32x64xf32, #tpu.memory_space<vmem>>, vector<1x32x64xf32>
    %325 = vector.shape_cast %324 : vector<1x32x64xf32> to vector<32x64xf32>
    %cst_246 = arith.constant dense<0.000000e+00> : vector<8x64xf32>
    %326 = tpu.matmul %323, %325, %cst_246 {dimension_numbers = #tpu.dot_dimension_numbers<[1], [0], [0], [1], [0, 0, 1, 1], [], []>} : vector<8x32xf32>, vector<32x64xf32>, vector<8x64xf32> -> vector<8x64xf32>
    %327 = arith.mulf %326, %326 : vector<8x64xf32>
    %328 = arith.mulf %326, %327 : vector<8x64xf32>
    %cst_247 = arith.constant 4.471500e-02 : f32
    %329 = vector.broadcast %cst_247 : f32 to vector<8x64xf32>
    %330 = arith.mulf %329, %328 : vector<8x64xf32>
    %331 = arith.addf %326, %330 : vector<8x64xf32>
    %cst_248 = arith.constant 0.797884583 : f32
    %332 = vector.broadcast %cst_248 : f32 to vector<8x64xf32>
    %333 = arith.mulf %332, %331 : vector<8x64xf32>
    %334 = math.tanh %333 : vector<8x64xf32>
    %cst_249 = arith.constant 1.000000e+00 : f32
    %335 = vector.broadcast %cst_249 : f32 to vector<8x64xf32>
    %336 = arith.addf %335, %334 : vector<8x64xf32>
    %cst_250 = arith.constant 5.000000e-01 : f32
    %337 = vector.broadcast %cst_250 : f32 to vector<8x64xf32>
    %338 = arith.mulf %337, %336 : vector<8x64xf32>
    %339 = arith.mulf %326, %338 : vector<8x64xf32>
    %c1_251 = arith.constant 1 : index
    %c0_252 = arith.constant 0 : index
    %c0_253 = arith.constant 0 : index
    %340 = vector.load %arg12[%c1_251, %c0_252, %c0_253] : memref<2x64x32xf32, #tpu.memory_space<vmem>>, vector<1x64x32xf32>
    %341 = vector.shape_cast %340 : vector<1x64x32xf32> to vector<64x32xf32>
    %cst_254 = arith.constant dense<0.000000e+00> : vector<8x32xf32>
    %342 = tpu.matmul %339, %341, %cst_254 {dimension_numbers = #tpu.dot_dimension_numbers<[1], [0], [0], [1], [0, 0, 1, 1], [], []>} : vector<8x64xf32>, vector<64x32xf32>, vector<8x32xf32> -> vector<8x32xf32>
    %343 = arith.addf %301, %342 : vector<8x32xf32>
    %c0_255 = arith.constant 0 : index
    %c0_256 = arith.constant 0 : index
    %344 = vector.load %arg13[%c0_255, %c0_256] : memref<1x32xf32, #tpu.memory_space<vmem>>, vector<1x32xf32>
    %cst_257 = arith.constant dense<0.000000e+00> : vector<8xf32>
    %345 = vector.multi_reduction <add>, %343, %cst_257 [1] : vector<8x32xf32> to vector<8xf32>
    %346 = vector.shape_cast %345 : vector<8xf32> to vector<8x1xf32>
    %cst_258 = arith.constant 3.200000e+01 : f32
    %347 = vector.broadcast %cst_258 : f32 to vector<8x1xf32>
    %348 = arith.divf %346, %347 : vector<8x1xf32>
    %349 = vector.broadcast %348 : vector<8x1xf32> to vector<8x32xf32>
    %350 = arith.subf %343, %349 : vector<8x32xf32>
    %351 = arith.mulf %350, %350 : vector<8x32xf32>
    %cst_259 = arith.constant dense<0.000000e+00> : vector<8xf32>
    %352 = vector.multi_reduction <add>, %351, %cst_259 [1] : vector<8x32xf32> to vector<8xf32>
    %353 = vector.shape_cast %352 : vector<8xf32> to vector<8x1xf32>
    %cst_260 = arith.constant 3.200000e+01 : f32
    %354 = vector.broadcast %cst_260 : f32 to vector<8x1xf32>
    %355 = arith.divf %353, %354 : vector<8x1xf32>
    %356 = vector.broadcast %348 : vector<8x1xf32> to vector<8x32xf32>
    %357 = arith.subf %343, %356 : vector<8x32xf32>
    %cst_261 = arith.constant 9.99999974E-6 : f32
    %358 = vector.broadcast %cst_261 : f32 to vector<8x1xf32>
    %359 = arith.addf %355, %358 : vector<8x1xf32>
    %360 = math.rsqrt %359 : vector<8x1xf32>
    %361 = vector.broadcast %360 : vector<8x1xf32> to vector<8x32xf32>
    %362 = arith.mulf %357, %361 : vector<8x32xf32>
    %363 = vector.broadcast %344 : vector<1x32xf32> to vector<8x32xf32>
    %364 = arith.mulf %362, %363 : vector<8x32xf32>
    %c0_262 = arith.constant 0 : index
    %c0_263 = arith.constant 0 : index
    %365 = vector.load %arg14[%c0_262, %c0_263] : memref<32x4xf32, #tpu.memory_space<vmem>>, vector<32x4xf32>
    %cst_264 = arith.constant dense<0.000000e+00> : vector<8x4xf32>
    %366 = tpu.matmul %364, %365, %cst_264 {dimension_numbers = #tpu.dot_dimension_numbers<[1], [0], [0], [1], [0, 0, 1, 1], [], []>} : vector<8x32xf32>, vector<32x4xf32>, vector<8x4xf32> -> vector<8x4xf32>
    %c0_265 = arith.constant 0 : index
    %c0_266 = arith.constant 0 : index
    %c0_267 = arith.constant 0 : index
    %367 = vector.load %arg2[%c0_265, %c0_266, %c0_267] : memref<1x8x4xf32, #tpu.memory_space<vmem>>, vector<1x8x4xf32>
    %368 = vector.shape_cast %367 : vector<1x8x4xf32> to vector<8x4xf32>
    %369 = arith.subf %366, %368 : vector<8x4xf32>
    %370 = tpu.iota {dimensions = array<i32: 0>} : vector<8x4xi32>
    %c7_i32 = arith.constant 7 : i32
    %371 = vector.broadcast %c7_i32 : i32 to vector<8x4xi32>
    %372 = arith.cmpi slt, %370, %371 : vector<8x4xi32>
    %cst_268 = arith.constant 0.000000e+00 : f32
    %373 = vector.broadcast %cst_268 : f32 to vector<8x4xf32>
    %374 = arith.select %372, %369, %373 : vector<8x4xi1>, vector<8x4xf32>
    %375 = arith.mulf %374, %374 : vector<8x4xf32>
    %376 = vector.shape_cast %375 : vector<8x4xf32> to vector<1x8x4xf32>
    %cst_269 = arith.constant dense<0.000000e+00> : vector<1xf32>
    %377 = vector.multi_reduction <add>, %376, %cst_269 [1, 2] : vector<1x8x4xf32> to vector<1xf32>
    %378 = vector.shape_cast %377 : vector<1xf32> to vector<1x1x1xf32>
    %379 = vector.extract %378[0, 0, 0] : f32 from vector<1x1x1xf32>
    %380 = vector.broadcast %379 : f32 to vector<8x128xf32>
    %c0_270 = arith.constant 0 : index
    %c0_271 = arith.constant 0 : index
    %c0_272 = arith.constant 0 : index
    %381 = vector.load %arg15[%c0_270, %c0_271, %c0_272] : memref<1x8x128xf32, #tpu.memory_space<vmem>>, vector<1x8x128xf32>
    %382 = vector.shape_cast %381 : vector<1x8x128xf32> to vector<8x128xf32>
    %383 = vector.shape_cast %380 : vector<8x128xf32> to vector<1x8x128xf32>
    tpu.vector_store %arg15[%c0_270, %c0_271, %c0_272], %383 {strides = array<i32>} : memref<1x8x128xf32, #tpu.memory_space<vmem>>, vector<1x8x128xf32>,
    return
  }
  func.func @transform_0(%arg0: i32) -> (i32, i32, i32) {
    %c0_i32 = arith.constant 0 : i32
    %c0_i32_0 = arith.constant 0 : i32
    %c0_i32_1 = arith.constant 0 : i32
    return %arg0, %c0_i32, %c0_i32_0 : i32, i32, i32
  }
  func.func @transform_1(%arg0: i32) -> (i32, i32, i32) {
    %c0_i32 = arith.constant 0 : i32
    %c0_i32_0 = arith.constant 0 : i32
    %c0_i32_1 = arith.constant 0 : i32
    return %arg0, %c0_i32, %c0_i32_0 : i32, i32, i32
  }
  func.func @transform_2(%arg0: i32) -> (i32, i32) {
    %c0_i32 = arith.constant 0 : i32
    %c0_i32_0 = arith.constant 0 : i32
    %c0_i32_1 = arith.constant 0 : i32
    return %c0_i32, %c0_i32_0 : i32, i32
  }
  func.func @transform_3(%arg0: i32) -> (i32, i32) {
    %c0_i32 = arith.constant 0 : i32
    %c0_i32_0 = arith.constant 0 : i32
    %c0_i32_1 = arith.constant 0 : i32
    return %c0_i32, %c0_i32_0 : i32, i32
  }
  func.func @transform_4(%arg0: i32) -> (i32, i32, i32) {
    %c0_i32 = arith.constant 0 : i32
    %c0_i32_0 = arith.constant 0 : i32
    %c0_i32_1 = arith.constant 0 : i32
    %c0_i32_2 = arith.constant 0 : i32
    return %c0_i32, %c0_i32_0, %c0_i32_1 : i32, i32, i32
  }
  func.func @transform_5(%arg0: i32) -> (i32, i32, i32, i32) {
    %c0_i32 = arith.constant 0 : i32
    %c0_i32_0 = arith.constant 0 : i32
    %c0_i32_1 = arith.constant 0 : i32
    %c0_i32_2 = arith.constant 0 : i32
    %c0_i32_3 = arith.constant 0 : i32
    return %c0_i32, %c0_i32_0, %c0_i32_1, %c0_i32_2 : i32, i32, i32, i32
  }
  func.func @transform_6(%arg0: i32) -> (i32, i32, i32, i32) {
    %c0_i32 = arith.constant 0 : i32
    %c0_i32_0 = arith.constant 0 : i32
    %c0_i32_1 = arith.constant 0 : i32
    %c0_i32_2 = arith.constant 0 : i32
    %c0_i32_3 = arith.constant 0 : i32
    return %c0_i32, %c0_i32_0, %c0_i32_1, %c0_i32_2 : i32, i32, i32, i32
  }
  func.func @transform_7(%arg0: i32) -> (i32, i32, i32, i32) {
    %c0_i32 = arith.constant 0 : i32
    %c0_i32_0 = arith.constant 0 : i32
    %c0_i32_1 = arith.constant 0 : i32
    %c0_i32_2 = arith.constant 0 : i32
    %c0_i32_3 = arith.constant 0 : i32
    return %c0_i32, %c0_i32_0, %c0_i32_1, %c0_i32_2 : i32, i32, i32, i32
  }
  func.func @transform_8(%arg0: i32) -> (i32, i32, i32, i32) {
    %c0_i32 = arith.constant 0 : i32
    %c0_i32_0 = arith.constant 0 : i32
    %c0_i32_1 = arith.constant 0 : i32
    %c0_i32_2 = arith.constant 0 : i32
    %c0_i32_3 = arith.constant 0 : i32
    return %c0_i32, %c0_i32_0, %c0_i32_1, %c0_i32_2 : i32, i32, i32, i32
  }
  func.func @transform_9(%arg0: i32) -> (i32, i32, i32) {
    %c0_i32 = arith.constant 0 : i32
    %c0_i32_0 = arith.constant 0 : i32
    %c0_i32_1 = arith.constant 0 : i32
    %c0_i32_2 = arith.constant 0 : i32
    return %c0_i32, %c0_i32_0, %c0_i32_1 : i32, i32, i32
  }
  func.func @transform_10(%arg0: i32) -> (i32, i32, i32) {
    %c0_i32 = arith.constant 0 : i32
    %c0_i32_0 = arith.constant 0 : i32
    %c0_i32_1 = arith.constant 0 : i32
    %c0_i32_2 = arith.constant 0 : i32
    return %c0_i32, %c0_i32_0, %c0_i32_1 : i32, i32, i32
  }
  func.func @transform_11(%arg0: i32) -> (i32, i32, i32) {
    %c0_i32 = arith.constant 0 : i32
    %c0_i32_0 = arith.constant 0 : i32
    %c0_i32_1 = arith.constant 0 : i32
    %c0_i32_2 = arith.constant 0 : i32
    return %c0_i32, %c0_i32_0, %c0_i32_1 : i32, i32, i32
  }
  func.func @transform_12(%arg0: i32) -> (i32, i32) {
    %c0_i32 = arith.constant 0 : i32
    %c0_i32_0 = arith.constant 0 : i32
    %c0_i32_1 = arith.constant 0 : i32
    return %c0_i32, %c0_i32_0 : i32, i32
  }
  func.func @transform_13(%arg0: i32) -> (i32, i32) {
    %c0_i32 = arith.constant 0 : i32
    %c0_i32_0 = arith.constant 0 : i32
    %c0_i32_1 = arith.constant 0 : i32
    return %c0_i32, %c0_i32_0 : i32, i32
  }
  func.func @transform_14(%arg0: i32) -> (i32, i32, i32) {
    %c0_i32 = arith.constant 0 : i32
    %c0_i32_0 = arith.constant 0 : i32
    %c0_i32_1 = arith.constant 0 : i32
    return %arg0, %c0_i32, %c0_i32_0 : i32, i32, i32
  }
}

</mosaic_0001>

<bundles_post_ra>
// kernel: continuous_autoregressive_loss.1
= control target key start
LH: loop header
LB: loop body
LE: loop exit
PB: predicated region body
PF: predicated region fallthrough
CT: control target
= control target key end

     0   :  { %s3198_s0 = inlined_call_operand.vmem [shape: f32[2,8,4], index: 0, kind: input, shape index: {}]   ;;  %s3199_s1 = inlined_call_operand.vmem [shape: f32[2,8,4], index: 1, kind: input, shape index: {}]   ;;  %s3200_s2 = inlined_call_operand.vmem [shape: f32[4,32], index: 2, kind: input, shape index: {}]   ;;  %s3201_s3 = inlined_call_operand.vmem [shape: f32[8,32], index: 3, kind: input, shape index: {}]   ;;  %s3202_s4 = inlined_call_operand.vmem [shape: f32[2,1,32], index: 4, kind: input, shape index: {}, may-alias: {4,9}]   ;;  %s3203_s5 = inlined_call_operand.hbm [shape: f32[2,4,32,8], index: 5, kind: input, shape index: {}]   ;;  %s3204_s6 = inlined_call_operand.hbm [shape: f32[2,4,32,8], index: 6, kind: input, shape index: {}]   ;;  %s3205_s7 = inlined_call_operand.hbm [shape: f32[2,4,32,8], index: 7, kind: input, shape index: {}]   ;;  %s3206_s8 = inlined_call_operand.hbm [shape: f32[2,4,8,32], index: 8, kind: input, shape index: {}]   ;;  %s3207_s9 = inlined_call_operand.vmem [shape: f32[2,1,32], index: 9, kind: input, shape index: {}, may-alias: {4,9}]   ;;  %s3208_s10 = inlined_call_operand.vmem [shape: f32[2,32,64], index: 10, kind: input, shape index: {}]   ;;  %s3209_s11 = inlined_call_operand.hbm [shape: f32[2,64,32], index: 11, kind: input, shape index: {}]   ;;  %s3210_s12 = inlined_call_operand.vmem [shape: f32[1,32], index: 12, kind: input, shape index: {}]   ;;  %s3211_s13 = inlined_call_operand.vmem [shape: f32[32,4], index: 13, kind: input, shape index: {}]   ;;  %s3212_s14 = inlined_call_operand.vmem [shape: f32[2,8,128], index: 14, kind: output, shape index: {}]  }
   0x1   :  { %3214 = sst [smem:[#allocation14_spill]] %s3203_s5 }
   0x2   :  { %3215 = sst [smem:[#allocation15_spill]] %s3204_s6 }
   0x3   :  { %3216 = sst [smem:[#allocation16_spill]] %s3206_s8 }
   0x4   :  { %19 = vsyncpa [#allocation3], 0 }
   0x5   :  { %20 = vsyncpa [#allocation5], 0 }
   0x6   :  { %21 = vsyncpa [#allocation8], 0  ;;  %s2897_s29 = smov 0  }
   0x7 LB: > { %3217 = sst [smem:[#allocation13_spill]] %s2811_s29  ;;  %s2903_s30 = sadd.s32 4294967295, %s2811_s29   ;;  %s2811_s29 = sphi %s2897_s29, %s27_s29  }
   0x8   : > { %p2438_p0 = scmp.ge.s32.totalorder %s2811_s29, 1  ;;  %p362_p1 = scmp.lt.s32.totalorder %s2811_s29, 3 }
   0x9   : > { %p2563_p2 = scmp.eq.s32.totalorder %s2903_s30, 0  ;;  %s3218_s6 = sld [smem:[#allocation15_spill]] }
   0xa   : > { %p2911_p3 = pnand %p2438_p0, %p362_p1  ;;  %s3220_s8 = sld [smem:[#allocation16_spill]] }
   0xb   : > { %s2813_s22 = smov [#allocation4]   ;;  %s2814_s25 = smov [#allocation7]  }
   0xc   : > { %p2547_p4 = pneg %p2911_p3  ;;  %s398_s23 = sshll.u32 %s2813_s22, 4  ;;  %s399_s23 = int_to_ptr.vmem [resolvable:$true] %s398_s23 }
   0xd   : > { %s426_s26 = sshll.u32 %s2814_s25, 4  ;;  %s3222_s5 = sld [smem:[#allocation14_spill]]  ;;  %s427_s26 = int_to_ptr.vmem [resolvable:$true] %s426_s26 }
   0xe   : > { %p2922_p5 = pnand %p2563_p2, %p2547_p4  ;;  %s2815_s16 = smov 128  }
   0xf   : > { %s396_s17 = sshll.u32 %s3218_s6, 4  ;;  %s2816_s19 = smov 8   ;;  %s397_s17 = int_to_ptr.hbm [resolvable:$true] %s396_s17 }
  0x10   : > { %s424_s21 = sshll.u32 %s3220_s8, 4  ;;  %s2817_s20 = smov [#allocation2]   ;;  %s425_s21 = int_to_ptr.hbm [resolvable:$true] %s424_s21 }
  0x11   : > { %2553 = dma.hbm_to_vmem [thread:$0]  (!%p2922_p5), %s397_s17, 4096, %s399_s23, [#allocation5], %s2815_s16, %s2815_s16, %s2816_s19  }
  0x12   : > { %2559 = dma.hbm_to_vmem [thread:$0]  (!%p2922_p5), %s425_s21, 1024, %s427_s26, [#allocation8], %s2815_s16, %s2815_s16, %s2816_s19  }
  0x13   : > { %s382_s15 = sshll.u32 %s3222_s5, 4  ;;  %s384_s22 = sshll.u32 %s2817_s20, 4  ;;  %s383_s15 = int_to_ptr.hbm [resolvable:$true] %s382_s15  ;;  %s385_s22 = int_to_ptr.vmem [resolvable:$true] %s384_s22 }
  0x14   : > { %s410_s25 = sshll.u32 %s3205_s7, 4  ;;  %s444_s5 = sshll.u32 %s3209_s11, 4  ;;  %s411_s25 = int_to_ptr.hbm [resolvable:$true] %s410_s25  ;;  %s445_s5 = int_to_ptr.hbm [resolvable:$true] %s444_s5 }
  0x15   : > { %2550 = dma.hbm_to_vmem [thread:$0]  (!%p2922_p5), %s383_s15, 4096, %s385_s22, [#allocation3], %s2815_s16, %s2815_s16, %s2816_s19  }
  0x16   : > { %s2818_s29 = smov [#allocation6]   ;;  %s2819_s21 = smov [#allocation9]  }
  0x17   : > { %s412_s17 = sshll.u32 %s2818_s29, 4  ;;  %s446_s23 = sshll.u32 %s2819_s21, 4  ;;  %s413_s17 = int_to_ptr.vmem [resolvable:$true] %s412_s17  ;;  %s447_s23 = int_to_ptr.vmem [resolvable:$true] %s446_s23 }
  0x18   : > { %2556 = dma.hbm_to_vmem [thread:$0]  (!%p2922_p5), %s411_s25, 4096, %s413_s17, [#allocation5], %s2815_s16, %s2815_s16, %s2816_s19  }
  0x19   : > { %2562 = dma.hbm_to_vmem [thread:$0]  (!%p2922_p5), %s445_s5, 2048, %s447_s23, [#allocation8], %s2815_s16, %s2815_s16, %s2816_s19  }
  0x1a   : > { %482 = sbr.rel (%p2911_p3) target bundleno = 6894 (0x1aee), region = 76 }
  0x1f   : > { %2798 = dma.done.wait (%p2563_p2), [#allocation3], 4096  }
  0x20   : > { %2800 = vsyncadd (%p2563_p2), [#allocation3], 4294963200 }
  0x21   : > { %2802 = dma.done.wait (%p2563_p2), [#allocation5], 8192  }
  0x22   : > { %2804 = vsyncadd (%p2563_p2), [#allocation5], 4294959104 }
  0x23   : > { %2806 = dma.done.wait (%p2563_p2), [#allocation8], 3072  }
  0x24   : > { %2808 = vsyncadd (%p2563_p2), [#allocation8], 4294964224  ;;  %p551_p6 = scmp.lt.s32.totalorder %s2903_s30, 1  ;;  %vm570_vm0 = vcmask 1043456   ;;  %vm566_vm1 = vcmask 31744   ;;  %v565_v2 = vld [vmem:[%s3201_s3] sm:$0xff]  ;;  %v594_v59 = vlaneseq }
  0x25   : > { %v564_v0 = vld [vmem:[%s3200_s2] sm:$0xf]  ;;  %vm601_vm2 = vcmask 261120   ;;  %v2820_v6 = vmov 32.0   ;;  %v638_v18 = vld [vmem:[#allocation2 + $0x18] sm:$0xff]  ;;  %v637_v20 = vld [vmem:[#allocation2 + $0x10] sm:$0xff] }
  0x26   : > { %s3225_s30 = smov (!%p551_p6, %s2903_s30), 1  ;;  %2454 = vmatpush.msk.msra.mxu0 %vm570_vm0, %v564_v0  ;;  %2595 = vrcp.f32 %v2820_v6  ;;  %v665_v19 = vld [vmem:[#allocation4 + $0x18] sm:$0xff]  ;;  %654 = vmatpush.msra.mxu3 %v638_v18  ;;  %v664_v21 = vld [vmem:[#allocation4 + $0x10] sm:$0xff]  ;;  %v636_v22 = vld [vmem:[#allocation2 + $0x8] sm:$0xff]  ;;  %vm710_vm7 = vcmask 64512   ;;  %v3004_v60 = vshrl.u32 %v594_v59, 7 }
  0x27   : > { %s2961_s5 = sshll.u32 %s3225_s30, 3  ;;  %678 = vmatpush.msra.mxu2 %v665_v19  ;;  %v663_v23 = vld [vmem:[#allocation4 + $0x8] sm:$0xff]  ;;  %v635_v24 = vld [vmem:[#allocation2] sm:$0xff]  ;;  %v689_v26 = vld [vmem:[#allocation6 + $0x18] sm:$0xff]  ;;  %v597_v61 = vand.u32 127, %v594_v59 }
  0x28   : > { %s554_s29 = scalar_lea.vmem %s3198_s0, %s2961_s5  ;;  %655 = vmatpush.msra.mxu3 %v637_v20  ;;  %v662_v25 = vld [vmem:[#allocation4] sm:$0xff]  ;;  %v789_v27 = vld [vmem:[#allocation2 + $0x38] sm:$0xff]  ;;  %v688_v28 = vld [vmem:[#allocation6 + $0x10] sm:$0xff]  ;;  %v2821_v62 = vmov -1e+30   ;;  %s558_s30 = scalar_lea.vmem %s3199_s1, %s2961_s5 }
  0x29   : > { %v563_v1 = vld [vmem:[%s554_s29] sm:$0xff]  ;;  %679 = vmatpush.msra.mxu2 %v664_v21  ;;  %v788_v29 = vld [vmem:[#allocation2 + $0x30] sm:$0xff]  ;;  %v687_v30 = vld [vmem:[#allocation6 + $0x8] sm:$0xff]  ;;  %vm598_vm8 = vcmp.le.s32.totalorder %v597_v61, %v3004_v60  ;;  %s562_s20 = scalar_lea.vmem %s3212_s14, %s2961_s5 }
  0x2a   : > { %2455 = vmatmul.msk.f32.vlgmr.msra.gmra.mxu0 %vm566_vm1, %v563_v1  ;;  %656 = vmatpush.msra.mxu3 %v636_v22  ;;  %v787_v31 = vld [vmem:[#allocation2 + $0x28] sm:$0xff]  ;;  %v686_v32 = vld [vmem:[#allocation6] sm:$0xff]  ;;  %v814_v47 = vld [vmem:[#allocation4 + $0x38] sm:$0xff]  ;;  %v3007_v63 = vsel %vm598_vm8, 0.0, %v2821_v62 }
  0x2b   : > { %680 = vmatpush.msra.mxu2 %v663_v23  ;;  %v786_v33 = vld [vmem:[#allocation2 + $0x20] sm:$0xff]  ;;  %v813_v48 = vld [vmem:[#allocation4 + $0x30] sm:$0xff]  ;;  %v812_v49 = vld [vmem:[#allocation4 + $0x28] sm:$0xff] }
  0x2c   : > { %v2596_v7 = vpop.eup %2595  ;;  %657 = vmatpush.msra.mxu3 %v635_v24  ;;  %v2590_v43 = vld [vmem:[%s3202_s4] ss:$0 sm:$0xff]  ;;  %v839_v51 = vld [vmem:[#allocation6 + $0x38] sm:$0xff]  ;;  %v838_v54 = vld [vmem:[#allocation6 + $0x30] sm:$0xff] }
  0x2d   : > { %v606_v8 = vmul.f32 32.0, %v2596_v7  ;;  %vm610_vm3 = vweird.f32 %v2596_v7  ;;  %681 = vmatpush.msra.mxu2 %v662_v25  ;;  %v811_v50 = vld [vmem:[#allocation4 + $0x20] sm:$0xff]  ;;  %v837_v55 = vld [vmem:[#allocation6 + $0x28] sm:$0xff]  ;;  %v985_v23 = vld [vmem:[#allocation2 + $0x58] sm:$0xff] }
  0x2e   : > { %702 = vmatpush.msrb.mxu3 %v689_v26  ;;  %v836_v56 = vld [vmem:[#allocation6 + $0x20] sm:$0xff]  ;;  %v984_v24 = vld [vmem:[#allocation2 + $0x50] sm:$0xff]  ;;  %v983_v25 = vld [vmem:[#allocation2 + $0x48] sm:$0xff] }
  0x2f   : > { %v607_v9 = vsub.f32 1.0, %v606_v8  ;;  %802 = vmatpush.msrb.mxu2 %v789_v27  ;;  %v982_v26 = vld [vmem:[#allocation2 + $0x40] sm:$0xff]  ;;  %v1159_v61 = vld [vmem:[#allocation2 + $0x78] sm:$0xff] }
  0x30   : > { %703 = vmatpush.msrb.mxu3 %v688_v28  ;;  %v784_v28 = vld [vmem:[#allocation7] sm:$0xff] }
  0x31   : > { %v608_v10 = vmul.f32 %v2596_v7, %v607_v9  ;;  %803 = vmatpush.msrb.mxu2 %v788_v29  ;;  %v1032_v59 = vld [vmem:[#allocation6 + $0x40] sm:$0xff] }
  0x32   : > { %704 = vmatpush.msrb.mxu3 %v687_v30 }
  0x33   : > { %v609_v11 = vadd.f32 %v2596_v7, %v608_v10  ;;  %804 = vmatpush.msrb.mxu2 %v787_v31 }
  0x34   : > { %705 = vmatpush.msrb.mxu3 %v686_v32 }
  0x35   : > { %v2978_v12 = vsel %vm610_vm3, %v2596_v7, %v609_v11  ;;  %805 = vmatpush.msrb.mxu2 %v786_v33 }
  0xa7   : > { %v591_v3 = vpop.f32.mrf.mxu0 }
  0xa8   : > { %v2974_v4 = vadd.f32 %v591_v3, %v565_v2 }
  0xaa   : > { %v602_v5 = vsel %vm601_vm2, %v2974_v4, 0.0 }
  0xab   : > { %603 = vadd.xlane.f32.xlu0 %v602_v5 }
 0x11e   : > { %v604_v13 = vpop.xlane.xlu0 %603 }
 0x11f   : > { %v612_v14 = vmul.f32 %v2978_v12, %v604_v13 }
 0x121   : > { %v613_v15 = vsub.f32 %v2974_v4, %v612_v14 }
 0x123   : > { %v614_v16 = vmul.f32 %v613_v15, %v613_v15 }
 0x125   : > { %v615_v17 = vsel %vm601_vm2, %v614_v16, 0.0 }
 0x126   : > { %616 = vadd.xlane.f32.xlu0 %v615_v17 }
 0x199   : > { %v617_v34 = vpop.xlane.xlu0 %616 }
 0x19a   : > { %v618_v35 = vmul.f32 %v617_v34, %v2978_v12 }
 0x19c   : > { %v619_v36 = vadd.f32 1e-05, %v618_v35 }
 0x19e   : > { %2597 = vrsqrt.f32 %v619_v36  ;;  %vm626_vm5 = vweird.f32 %v619_v36 }
 0x1a4   : > { %v2598_v37 = vpop.eup %2597 }
 0x1a5   : > { %v621_v38 = vmul.f32 %v2598_v37, %v619_v36  ;;  %vm627_vm4 = vweird.f32 %v2598_v37 }
 0x1a6   : > { %vm628_vm6 = vmor %vm626_vm5, %vm627_vm4 }
 0x1a7   : > { %v622_v39 = vmul.f32 %v2598_v37, %v621_v38  ;;  %v1010_v38 = vld [vmem:[#allocation4 + $0x58] sm:$0xff] }
 0x1a9   : > { %v623_v40 = vmul.f32 0.5, %v622_v39  ;;  %v1009_v39 = vld [vmem:[#allocation4 + $0x50] sm:$0xff] }
 0x1ab   : > { %v624_v41 = vsub.f32 1.5, %v623_v40  ;;  %v1008_v40 = vld [vmem:[#allocation4 + $0x48] sm:$0xff] }
 0x1ad   : > { %v625_v42 = vmul.f32 %v2598_v37, %v624_v41  ;;  %v1007_v41 = vld [vmem:[#allocation4 + $0x40] sm:$0xff] }
 0x1af   : > { %v629_v44 = vsel %vm628_vm6, %v2598_v37, %v625_v42 }
 0x1b0   : > { %v630_v45 = vmul.f32 %v629_v44, %v613_v15 }
 0x1b2   : > { %v2987_v46 = vmul.f32 %v2590_v43, %v630_v45 }
 0x1b4   : > { %2456 = vmatmul.msk.f32.vlgmr.msra.gmra.mxu3 %vm601_vm2, %v2987_v46  ;;  %2457 = vmatmul.msk.f32.vlgmr.msra.gmra.mxu2 %vm601_vm2, %v2987_v46 }
 0x1b5   : > { %827 = vmatpush.msra.mxu3 %v814_v47 }
 0x1b7   : > { %828 = vmatpush.msra.mxu3 %v813_v48 }
 0x1b9   : > { %829 = vmatpush.msra.mxu3 %v812_v49 }
 0x1bb   : > { %830 = vmatpush.msra.mxu3 %v811_v50 }
 0x1bc   : > { %2458 = vmatmul.msk.f32.vlgmr.msrb.gmra.mxu3 %vm601_vm2, %v2987_v46  ;;  %2462 = vmatmul.msk.f32.vlgmr.msrb.gmra.mxu2 %vm601_vm2, %v2987_v46 }
 0x1c4   : > { %2463 = vmatmul.msk.f32.vlgmr.msra.gmra.mxu3 %vm601_vm2, %v2987_v46 }
 0x237   : > { %v659_v52 = vpop.f32.mrf.mxu3  ;;  %v683_v53 = vpop.f32.mrf.mxu2 }
 0x238   : > { %2459 = vmatpush.xpose.msk.msrb.mxu0 %vm710_vm7, %v683_v53 }
 0x23b   : > { %2460 = vmatmul.msk.f32.vlgmr.msrb.gmra.mxu0 %vm710_vm7, %v659_v52 }
 0x23c   : > { %852 = vmatpush.msra.mxu0 %v839_v51 }
 0x23e   : > { %853 = vmatpush.msra.mxu0 %v838_v54 }
 0x23f   : > { %v707_v57 = vpop.f32.mrf.mxu3  ;;  %v807_v27 = vpop.f32.mrf.mxu2 }
 0x240   : > { %854 = vmatpush.msra.mxu0 %v837_v55  ;;  %779 = vmatpush.msra.mxu1 %v707_v57  ;;  %v934_v55 = vld [vmem:[#allocation7 + $0x8] sm:$0xff]  ;;  %v1034_v57 = vld [vmem:[#allocation6 + $0x50] sm:$0xff] }
 0x241   : > { %953 = vmatpush.msrb.mxu3 %v934_v55 }
 0x242   : > { %855 = vmatpush.msra.mxu0 %v836_v56  ;;  %v1035_v56 = vld [vmem:[#allocation6 + $0x58] sm:$0xff] }
 0x243   : > { %2464 = vmatmul.msk.f32.vlgmr.msra.gmra.mxu0 %vm601_vm2, %v2987_v46  ;;  %1048 = vmatpush.msra.mxu3 %v1035_v56 }
 0x244   : > { %976 = vmatpush.msrb.mxu0 %v784_v28  ;;  %v1206_v28 = vld [vmem:[#allocation6 + $0x60] sm:$0xff] }
 0x245   : > { %1049 = vmatpush.msra.mxu3 %v1034_v57 }
 0x247   : > { %v832_v58 = vpop.f32.mrf.mxu3 }
 0x248   : > { %2465 = vmatpush.xpose.msk.msrb.mxu1 %vm710_vm7, %v832_v58  ;;  %v1033_v58 = vld [vmem:[#allocation6 + $0x48] sm:$0xff] }
 0x249   : > { %1050 = vmatpush.msra.mxu3 %v1033_v58 }
 0x24b   : > { %1051 = vmatpush.msra.mxu3 %v1032_v59 }
 0x2b8   : > { %v734_v0 = vpop.f32.mrf.mxu0 }
 0x2b9   : > { %v735_v1 = vadd.f32 %v734_v0, %v3007_v63  ;;  %v1158_v0 = vld [vmem:[#allocation2 + $0x70] sm:$0xff] }
 0x2bb   : > { %v737_v2 = vsel %vm710_vm7, %v735_v1, -inf }
 0x2bc   : > { %738 = vmax.xlane.f32.xlu1 %v737_v2  ;;  %v1156_v2 = vld [vmem:[#allocation2 + $0x60] sm:$0xff] }
 0x2c0   : > { %v857_v3 = vpop.f32.mrf.mxu0 }
 0x2c1   : > { %928 = vmatpush.msra.mxu2 %v857_v3  ;;  %v1184_v3 = vld [vmem:[#allocation4 + $0x78] sm:$0xff] }
 0x2c3   : > { %1023 = vmatpush.msrb.mxu2 %v1010_v38 }
 0x2c5   : > { %1024 = vmatpush.msrb.mxu2 %v1009_v39 }
 0x2c7   : > { %1025 = vmatpush.msrb.mxu2 %v1008_v40 }
 0x2c9   : > { %1026 = vmatpush.msrb.mxu2 %v1007_v41 }
 0x32f   : > { %v739_v5 = vpop.xlane.xlu1 %738 }
 0x330   : > { %v740_v6 = vsub.f32 %v735_v1, %v739_v5  ;;  %v1157_v1 = vld [vmem:[#allocation2 + $0x68] sm:$0xff] }
 0x332   : > { %v741_v7 = vmul.f32 1.442695, %v740_v6  ;;  %v1183_v6 = vld [vmem:[#allocation4 + $0x70] sm:$0xff] }
 0x334   : > { %2599 = vpow2.f32 %v741_v7 }
 0x33a   : > { %v2600_v8 = vpop.eup %2599 }
 0x33b   : > { %v743_v9 = vsel %vm710_vm7, %v2600_v8, 0.0 }
 0x33c   : > { %744 = vadd.xlane.f32.xlu1 %v743_v9  ;;  %v1181_v9 = vld [vmem:[#allocation4 + $0x60] sm:$0xff] }
 0x3af   : > { %v745_v10 = vpop.xlane.xlu1 %744 }
 0x3b0   : > { %2601 = vrcp.f32 %v745_v10  ;;  %v757_v15 = vand.u32 2147483648, %v745_v10  ;;  %v755_v17 = vand.u32 2147483647, %v745_v10  ;;  %vm751_vm10 = vweird.f32 %v745_v10 }
 0x3b2   : > { %v758_v19 = vor.u32 1.1754944e-38, %v757_v15  ;;  %vm756_vm12 = vcmp.eq.f32.partialorder %v755_v17, 8.507059e+37 }
 0x3b6   : > { %v2602_v11 = vpop.eup %2601 }
 0x3b7   : > { %v747_v13 = vmul.f32 %v2602_v11, %v745_v10  ;;  %vm752_vm9 = vweird.f32 %v2602_v11  ;;  %v1130_v10 = vld [vmem:[#allocation7 + $0x10] sm:$0xff] }
 0x3b8   : > { %vm753_vm11 = vmor %vm751_vm10, %vm752_vm9 }
 0x3b9   : > { %v748_v14 = vsub.f32 1.0, %v747_v13 }
 0x3bb   : > { %v749_v16 = vmul.f32 %v2602_v11, %v748_v14 }
 0x3bd   : > { %v750_v18 = vadd.f32 %v2602_v11, %v749_v16 }
 0x3bf   : > { %v754_v20 = vsel %vm753_vm11, %v2602_v11, %v750_v18 }
 0x3c0   : > { %v759_v21 = vsel %vm756_vm12, %v758_v19, %v754_v20 }
 0x3c1   : > { %v760_v22 = vmul.f32 %v2600_v8, %v759_v21  ;;  %v1182_v8 = vld [vmem:[#allocation4 + $0x68] sm:$0xff] }
 0x3c3   : > { %2461 = vmatmul.msk.f32.vlgmr.msra.gmra.mxu1 %vm710_vm7, %v760_v22 }
 0x3c4   : > { %998 = vmatpush.msra.mxu1 %v985_v23 }
 0x3c6   : > { %999 = vmatpush.msra.mxu1 %v984_v24 }
 0x3c8   : > { %1000 = vmatpush.msra.mxu1 %v983_v25  ;;  %v1209_v25 = vld [vmem:[#allocation6 + $0x78] sm:$0xff] }
 0x3ca   : > { %1001 = vmatpush.msra.mxu1 %v982_v26  ;;  %v1208_v26 = vld [vmem:[#allocation6 + $0x70] sm:$0xff] }
 0x3cb   : > { %2466 = vmatmul.msk.f32.vlgmr.msrb.gmra.mxu1 %vm710_vm7, %v807_v27  ;;  %v1207_v27 = vld [vmem:[#allocation6 + $0x68] sm:$0xff] }
 0x3d3   : > { %2470 = vmatmul.msk.f32.vlgmr.msra.gmra.mxu1 %vm601_vm2, %v2987_v46 }
 0x440   : > { %v781_v29 = vpop.f32.mrf.mxu1 }
 0x441   : > { %2469 = vmatmul.msk.f32.vlgmr.msrb.gmra.mxu0 %vm710_vm7, %v781_v29 }
 0x448   : > { %v883_v30 = vpop.f32.mrf.mxu1 }
 0x449   : > { %v884_v31 = vadd.f32 %v883_v30, %v3007_v63 }
 0x44b   : > { %v886_v32 = vsel %vm710_vm7, %v884_v31, -inf }
 0x44c   : > { %887 = vmax.xlane.f32.xlu2 %v886_v32 }
 0x450   : > { %v1003_v7 = vpop.f32.mrf.mxu1 }
 0x4be   : > { %v978_v11 = vpop.f32.mrf.mxu0 }
 0x4bf   : > { %v888_v33 = vpop.xlane.xlu2 %887 }
 0x4c0   : > { %v889_v34 = vsub.f32 %v884_v31, %v888_v33 }
 0x4c2   : > { %v890_v35 = vmul.f32 1.442695, %v889_v34 }
 0x4c4   : > { %2603 = vpow2.f32 %v890_v35 }
 0x4ca   : > { %v2604_v36 = vpop.eup %2603 }
 0x4cb   : > { %v892_v37 = vsel %vm710_vm7, %v2604_v36, 0.0 }
 0x4cc   : > { %893 = vadd.xlane.f32.xlu2 %v892_v37 }
 0x53f   : > { %v894_v42 = vpop.xlane.xlu2 %893 }
 0x540   : > { %2605 = vrcp.f32 %v894_v42  ;;  %v906_v47 = vand.u32 2147483648, %v894_v42  ;;  %v904_v49 = vand.u32 2147483647, %v894_v42  ;;  %vm900_vm14 = vweird.f32 %v894_v42 }
 0x542   : > { %v907_v51 = vor.u32 1.1754944e-38, %v906_v47  ;;  %vm905_vm0 = vcmp.eq.f32.partialorder %v904_v49, 8.507059e+37 }
 0x546   : > { %v2606_v43 = vpop.eup %2605 }
 0x547   : > { %v896_v44 = vmul.f32 %v2606_v43, %v894_v42  ;;  %vm901_vm13 = vweird.f32 %v2606_v43 }
 0x548   : > { %vm902_vm15 = vmor %vm900_vm14, %vm901_vm13 }
 0x549   : > { %v897_v45 = vsub.f32 1.0, %v896_v44 }
 0x54b   : > { %v898_v48 = vmul.f32 %v2606_v43, %v897_v45 }
 0x54d   : > { %v899_v50 = vadd.f32 %v2606_v43, %v898_v48 }
 0x54f   : > { %v903_v52 = vsel %vm902_vm15, %v2606_v43, %v899_v50  ;;  %vm1401_vm15 = vcmask 523264  }
 0x550   : > { %v908_v53 = vsel %vm905_vm0, %v907_v51, %v903_v52 }
 0x551   : > { %v909_v54 = vmul.f32 %v2604_v36, %v908_v53 }
 0x553   : > { %2467 = vmatmul.msk.f32.vlgmr.msra.gmra.mxu2 %vm710_vm7, %v909_v54  ;;  %v1304_v54 = vld [vmem:[#allocation7 + $0x18] sm:$0xff] }
 0x554   : > { %1149 = vmatpush.msra.mxu2 %v1130_v10 }
 0x55b   : > { %2471 = vmatmul.msk.f32.vlgmr.msrb.gmra.mxu2 %vm601_vm2, %v2987_v46 }
 0x5d6   : > { %v930_v62 = vpop.f32.mrf.mxu2 }
 0x5d7   : > { %2468 = vmatmul.msk.f32.vlgmr.msrb.gmra.mxu3 %vm710_vm7, %v930_v62 }
 0x5d8   : > { %1172 = vmatpush.msrb.mxu3 %v1159_v61 }
 0x5da   : > { %1173 = vmatpush.msrb.mxu3 %v1158_v0 }
 0x5dc   : > { %1174 = vmatpush.msrb.mxu3 %v1157_v1 }
 0x5de   : > { %v1028_v5 = vpop.f32.mrf.mxu2  ;;  %1175 = vmatpush.msrb.mxu3 %v1156_v2 }
 0x5df   : > { %2472 = vmatmul.msk.f32.vlgmr.msra.gmra.mxu3 %vm601_vm2, %v2987_v46  ;;  %2473 = vmatpush.xpose.msk.msra.mxu0 %vm710_vm7, %v1028_v5 }
 0x5e2   : > { %2474 = vmatmul.msk.f32.vlgmr.msra.gmra.mxu0 %vm710_vm7, %v1003_v7 }
 0x5e3   : > { %1197 = vmatpush.msrb.mxu0 %v1184_v3 }
 0x5e5   : > { %1198 = vmatpush.msrb.mxu0 %v1183_v6 }
 0x5e7   : > { %1199 = vmatpush.msrb.mxu0 %v1182_v8  ;;  %2477 = vmatmul.msk.f32.vlgmr.msrb.gmra.mxu3 %vm601_vm2, %v2987_v46 }
 0x5e9   : > { %1200 = vmatpush.msrb.mxu0 %v1181_v9 }
 0x5ea   : > { %2478 = vmatmul.msk.f32.vlgmr.msrb.gmra.mxu0 %vm601_vm2, %v2987_v46 }
 0x5eb   : > { %1323 = vmatpush.msra.mxu0 %v1304_v54 }
 0x65a   : > { %v955_v13 = vpop.f32.mrf.mxu3 }
 0x65b   : > { %v979_v14 = vadd.f32 %v978_v11, %v955_v13 }
 0x65f   : > { %v1079_v15 = vpop.f32.mrf.mxu0 }
 0x660   : > { %v1080_v16 = vadd.f32 %v1079_v15, %v3007_v63 }
 0x662   : > { %v1053_v17 = vpop.f32.mrf.mxu3  ;;  %v1082_v18 = vsel %vm710_vm7, %v1080_v16, -inf }
 0x663   : > { %1083 = vmax.xlane.f32.xlu0 %v1082_v18  ;;  %1124 = vmatpush.msrb.mxu1 %v1053_v17  ;;  %v1360_v17 = vld [vmem:[%s3208_s10 + $0x18] sm:$0xff]  ;;  %v1358_v18 = vld [vmem:[%s3208_s10 + $0x8] sm:$0xff] }
 0x665   : > { %1222 = vmatpush.msra.mxu1 %v1209_v25 }
 0x667   : > { %v1202_v19 = vpop.f32.mrf.mxu0  ;;  %1223 = vmatpush.msra.mxu1 %v1208_v26 }
 0x668   : > { %2480 = vmatpush.xpose.msk.msrb.mxu2 %vm710_vm7, %v1202_v19  ;;  %v1357_v19 = vld [vmem:[%s3208_s10] sm:$0xff] }
 0x669   : > { %1224 = vmatpush.msra.mxu1 %v1207_v27 }
 0x66a   : > { %v1177_v42 = vpop.f32.mrf.mxu3 }
 0x66b   : > { %1225 = vmatpush.msra.mxu1 %v1206_v28 }
 0x6d6   : > { %v1084_v20 = vpop.xlane.xlu0 %1083 }
 0x6d7   : > { %v1085_v21 = vsub.f32 %v1080_v16, %v1084_v20 }
 0x6d9   : > { %v1086_v22 = vmul.f32 1.442695, %v1085_v21 }
 0x6db   : > { %2607 = vpow2.f32 %v1086_v22 }
 0x6e1   : > { %v2608_v23 = vpop.eup %2607 }
 0x6e2   : > { %v1088_v24 = vsel %vm710_vm7, %v2608_v23, 0.0 }
 0x6e3   : > { %1089 = vadd.xlane.f32.xlu1 %v1088_v24 }
 0x756   : > { %v1090_v29 = vpop.xlane.xlu1 %1089 }
 0x757   : > { %2609 = vrcp.f32 %v1090_v29  ;;  %v1102_v33 = vand.u32 2147483648, %v1090_v29  ;;  %v1100_v35 = vand.u32 2147483647, %v1090_v29  ;;  %vm1096_vm4 = vweird.f32 %v1090_v29 }
 0x759   : > { %v1103_v37 = vor.u32 1.1754944e-38, %v1102_v33  ;;  %vm1101_vm6 = vcmp.eq.f32.partialorder %v1100_v35, 8.507059e+37  ;;  %v1400_v33 = vld [vmem:[#allocation9 + $0x38] sm:$0xff]  ;;  %v1398_v35 = vld [vmem:[#allocation9 + $0x28] sm:$0xff] }
 0x75d   : > { %v2610_v30 = vpop.eup %2609 }
 0x75e   : > { %v1092_v31 = vmul.f32 %v2610_v30, %v1090_v29  ;;  %vm1097_vm3 = vweird.f32 %v2610_v30  ;;  %v2591_v29 = vld [vmem:[%s3207_s9] ss:$0 sm:$0xff] }
 0x75f   : > { %vm1098_vm5 = vmor %vm1096_vm4, %vm1097_vm3 }
 0x760   : > { %v1093_v32 = vsub.f32 1.0, %v1092_v31 }
 0x762   : > { %v1094_v34 = vmul.f32 %v2610_v30, %v1093_v32 }
 0x764   : > { %v1095_v36 = vadd.f32 %v2610_v30, %v1094_v34  ;;  %v1399_v34 = vld [vmem:[#allocation9 + $0x30] sm:$0xff] }
 0x766   : > { %v1099_v38 = vsel %vm1098_vm5, %v2610_v30, %v1095_v36  ;;  %v1397_v36 = vld [vmem:[#allocation9 + $0x20] sm:$0xff] }
 0x767   : > { %v1104_v39 = vsel %vm1101_vm6, %v1103_v37, %v1099_v38  ;;  %v1396_v37 = vld [vmem:[#allocation9 + $0x18] sm:$0xff]  ;;  %v1395_v38 = vld [vmem:[#allocation9 + $0x10] sm:$0xff] }
 0x768   : > { %v1105_v40 = vmul.f32 %v2608_v23, %v1104_v39  ;;  %v1394_v39 = vld [vmem:[#allocation9 + $0x8] sm:$0xff] }
 0x76a   : > { %2475 = vmatmul.msk.f32.vlgmr.msrb.gmra.mxu1 %vm710_vm7, %v1105_v40  ;;  %v1393_v40 = vld [vmem:[#allocation9] sm:$0xff] }
 0x76b   : > { %1376 = vmatpush.msrb.mxu1 %v1360_v17  ;;  %v1609_v17 = vld [vmem:[#allocation2 + $0xa8] sm:$0xff] }
 0x772   : > { %2479 = vmatmul.msk.f32.vlgmr.msra.gmra.mxu1 %vm601_vm2, %v2987_v46 }
 0x7e7   : > { %v1126_v41 = vpop.f32.mrf.mxu1 }
 0x7e8   : > { %2476 = vmatmul.msk.f32.vlgmr.msra.gmra.mxu2 %vm710_vm7, %v1126_v41 }
 0x7e9   : > { %1413 = vmatpush.msra.mxu2 %v1400_v33 }
 0x7eb   : > { %1414 = vmatpush.msra.mxu2 %v1399_v34  ;;  %v1660_v34 = vld [vmem:[#allocation6 + $0xb0] sm:$0xff] }
 0x7ed   : > { %1415 = vmatpush.msra.mxu2 %v1398_v35  ;;  %v1659_v35 = vld [vmem:[#allocation6 + $0xa8] sm:$0xff] }
 0x7ef   : > { %v1227_v43 = vpop.f32.mrf.mxu1  ;;  %1416 = vmatpush.msra.mxu2 %v1397_v36  ;;  %v1658_v36 = vld [vmem:[#allocation6 + $0xa0] sm:$0xff] }
 0x7f0   : > { %2481 = vmatmul.msk.f32.vlgmr.msrb.gmra.mxu2 %vm710_vm7, %v1177_v42  ;;  %1298 = vmatpush.msra.mxu3 %v1227_v43 }
 0x7f1   : > { %1417 = vmatpush.msra.mxu2 %v1396_v37 }
 0x7f3   : > { %1418 = vmatpush.msra.mxu2 %v1395_v38 }
 0x7f5   : > { %1419 = vmatpush.msra.mxu2 %v1394_v39 }
 0x7f7   : > { %1420 = vmatpush.msra.mxu2 %v1393_v40 }
 0x86b   : > { %v1151_v44 = vpop.f32.mrf.mxu2 }
 0x86c   : > { %v1154_v45 = vadd.f32 %v1151_v44, %v979_v14 }
 0x873   : > { %v1253_v47 = vpop.f32.mrf.mxu2 }
 0x874   : > { %v1254_v48 = vadd.f32 %v1253_v47, %v3007_v63 }
 0x876   : > { %v1256_v49 = vsel %vm710_vm7, %v1254_v48, -inf }
 0x877   : > { %1257 = vmax.xlane.f32.xlu2 %v1256_v49 }
 0x8ea   : > { %v1258_v50 = vpop.xlane.xlu2 %1257 }
 0x8eb   : > { %v1259_v51 = vsub.f32 %v1254_v48, %v1258_v50 }
 0x8ed   : > { %v1260_v52 = vmul.f32 1.442695, %v1259_v51 }
 0x8ef   : > { %2611 = vpow2.f32 %v1260_v52 }
 0x8f5   : > { %v2612_v46 = vpop.eup %2611 }
 0x8f6   : > { %v1262_v53 = vsel %vm710_vm7, %v2612_v46, 0.0 }
 0x8f7   : > { %1263 = vadd.xlane.f32.xlu0 %v1262_v53 }
 0x96a   : > { %v1264_v55 = vpop.xlane.xlu0 %1263 }
 0x96b   : > { %2613 = vrcp.f32 %v1264_v55  ;;  %v1276_v59 = vand.u32 2147483648, %v1264_v55  ;;  %v1274_v62 = vand.u32 2147483647, %v1264_v55  ;;  %vm1270_vm9 = vweird.f32 %v1264_v55 }
 0x96d   : > { %v1277_v1 = vor.u32 1.1754944e-38, %v1276_v59  ;;  %vm1275_vm11 = vcmp.eq.f32.partialorder %v1274_v62, 8.507059e+37  ;;  %v1458_v59 = vld [vmem:[#allocation2 + $0x98] sm:$0xff] }
 0x96e   : > { %v1511_v62 = vld [vmem:[#allocation6 + $0x98] sm:$0xff]  ;;  %1474 = vmatpush.msrb.mxu3 %v1458_v59 }
 0x971   : > { %v2614_v56 = vpop.eup %2613 }
 0x972   : > { %v1266_v57 = vmul.f32 %v2614_v56, %v1264_v55  ;;  %vm1271_vm8 = vweird.f32 %v2614_v56 }
 0x973   : > { %vm1272_vm10 = vmor %vm1270_vm9, %vm1271_vm8 }
 0x974   : > { %v1267_v58 = vsub.f32 1.0, %v1266_v57 }
 0x976   : > { %v1268_v61 = vmul.f32 %v2614_v56, %v1267_v58 }
 0x978   : > { %v1269_v0 = vadd.f32 %v2614_v56, %v1268_v61  ;;  %v1486_v61 = vld [vmem:[#allocation4 + $0x98] sm:$0xff] }
 0x979   : > { %1499 = vmatpush.msrb.mxu0 %v1486_v61 }
 0x97a   : > { %v1273_v2 = vsel %vm1272_vm10, %v2614_v56, %v1269_v0  ;;  %v1636_v0 = vld [vmem:[#allocation4 + $0xb8] sm:$0xff] }
 0x97b   : > { %v1278_v3 = vsel %vm1275_vm11, %v1277_v1, %v1273_v2  ;;  %1649 = vmatpush.msrb.mxu2 %v1636_v0  ;;  %v1457_v1 = vld [vmem:[#allocation2 + $0x90] sm:$0xff] }
 0x97c   : > { %v1279_v5 = vmul.f32 %v2612_v46, %v1278_v3  ;;  %v1485_v2 = vld [vmem:[#allocation4 + $0x90] sm:$0xff]  ;;  %1475 = vmatpush.msrb.mxu3 %v1457_v1  ;;  %v1805_v1 = vld [vmem:[#allocation2 + $0xc8] sm:$0xff] }
 0x97d   : > { %v1510_v3 = vld [vmem:[#allocation6 + $0x90] sm:$0xff]  ;;  %1500 = vmatpush.msrb.mxu0 %v1485_v2  ;;  %v1804_v2 = vld [vmem:[#allocation2 + $0xc0] sm:$0xff] }
 0x97e   : > { %2482 = vmatmul.msk.f32.vlgmr.msra.gmra.mxu3 %vm710_vm7, %v1279_v5  ;;  %v1635_v5 = vld [vmem:[#allocation4 + $0xb0] sm:$0xff] }
 0x97f   : > { %1650 = vmatpush.msrb.mxu2 %v1635_v5  ;;  %v1806_v0 = vld [vmem:[#allocation2 + $0xd0] sm:$0xff]  ;;  %v1606_v5 = vld [vmem:[#allocation7 + $0x20] sm:$0xff] }
 0xa01   : > { %v1300_v6 = vpop.f32.mrf.mxu3 }
 0xa02   : > { %2483 = vmatmul.msk.f32.vlgmr.msra.gmra.mxu0 %vm710_vm7, %v1300_v6  ;;  %v1456_v6 = vld [vmem:[#allocation2 + $0x88] sm:$0xff] }
 0xa03   : > { %1476 = vmatpush.msrb.mxu3 %v1456_v6 }
 0xa7f   : > { %v1325_v7 = vpop.f32.mrf.mxu0 }
 0xa80   : > { %v1328_v8 = vadd.f32 %v1325_v7, %v1154_v45  ;;  %v1484_v7 = vld [vmem:[#allocation4 + $0x88] sm:$0xff] }
 0xa81   : > { %1501 = vmatpush.msrb.mxu0 %v1484_v7 }
 0xa82   : > { %v3047_v9 = vadd.f32 %v1328_v8, %v2974_v4  ;;  %v1359_v4 = vld [vmem:[%s3208_s10 + $0x10] sm:$0xff]  ;;  %v1509_v8 = vld [vmem:[#allocation6 + $0x88] sm:$0xff] }
 0xa83   : > { %1377 = vmatpush.msrb.mxu1 %v1359_v4 }
 0xa84   : > { %v1331_v10 = vsel %vm601_vm2, %v3047_v9, 0.0 }
 0xa85   : > { %1332 = vadd.xlane.f32.xlu1 %v1331_v10  ;;  %1378 = vmatpush.msrb.mxu1 %v1358_v18  ;;  %v1455_v10 = vld [vmem:[#allocation2 + $0x80] sm:$0xff] }
 0xa86   : > { %1477 = vmatpush.msrb.mxu3 %v1455_v10  ;;  %v1608_v18 = vld [vmem:[#allocation2 + $0xa0] sm:$0xff] }
 0xa87   : > { %1379 = vmatpush.msrb.mxu1 %v1357_v19 }
 0xa89   : > { %1524 = vmatpush.msra.mxu1 %v1511_v62  ;;  %v1807_v62 = vld [vmem:[#allocation2 + $0xd8] sm:$0xff] }
 0xa8b   : > { %1525 = vmatpush.msra.mxu1 %v1510_v3 }
 0xa8d   : > { %1526 = vmatpush.msra.mxu1 %v1509_v8 }
 0xaf8   : > { %v1333_v11 = vpop.xlane.xlu1 %1332 }
 0xaf9   : > { %v1334_v13 = vmul.f32 %v1333_v11, %v2978_v12  ;;  %v1483_v11 = vld [vmem:[#allocation4 + $0x80] sm:$0xff] }
 0xafa   : > { %1502 = vmatpush.msrb.mxu0 %v1483_v11 }
 0xafb   : > { %v1335_v14 = vsub.f32 %v3047_v9, %v1334_v13  ;;  %v1508_v13 = vld [vmem:[#allocation6 + $0x80] sm:$0xff] }
 0xafc   : > { %1527 = vmatpush.msra.mxu1 %v1508_v13 }
 0xafd   : > { %v1336_v15 = vmul.f32 %v1335_v14, %v1335_v14 }
 0xaff   : > { %v1337_v16 = vsel %vm601_vm2, %v1336_v15, 0.0  ;;  %v1611_v15 = vld [vmem:[#allocation2 + $0xb8] sm:$0xff] }
 0xb00   : > { %1338 = vadd.xlane.f32.xlu2 %v1337_v16  ;;  %v1610_v16 = vld [vmem:[#allocation2 + $0xb0] sm:$0xff] }
 0xb73   : > { %v1339_v20 = vpop.xlane.xlu2 %1338 }
 0xb74   : > { %v1340_v21 = vmul.f32 %v1339_v20, %v2978_v12 }
 0xb76   : > { %v1341_v22 = vadd.f32 1e-05, %v1340_v21 }
 0xb78   : > { %2615 = vrsqrt.f32 %v1341_v22  ;;  %vm1348_vm13 = vweird.f32 %v1341_v22 }
 0xb7e   : > { %v2616_v23 = vpop.eup %2615 }
 0xb7f   : > { %v1343_v24 = vmul.f32 %v2616_v23, %v1341_v22  ;;  %vm1349_vm12 = vweird.f32 %v2616_v23 }
 0xb80   : > { %vm1350_vm14 = vmor %vm1348_vm13, %vm1349_vm12 }
 0xb81   : > { %v1344_v25 = vmul.f32 %v2616_v23, %v1343_v24 }
 0xb83   : > { %v1345_v26 = vmul.f32 0.5, %v1344_v25 }
 0xb85   : > { %v1346_v27 = vsub.f32 1.5, %v1345_v26 }
 0xb87   : > { %v1347_v28 = vmul.f32 %v2616_v23, %v1346_v27  ;;  %v2592_v27 = vld [vmem:[%s3202_s4 + $0x1] ss:$0 sm:$0xff] }
 0xb89   : > { %v1351_v30 = vsel %vm1350_vm14, %v2616_v23, %v1347_v28 }
 0xb8a   : > { %v1352_v31 = vmul.f32 %v1351_v30, %v1335_v14  ;;  %v1633_v14 = vld [vmem:[#allocation4 + $0xa0] sm:$0xff] }
 0xb8c   : > { %v1356_v32 = vmul.f32 %v2591_v29, %v1352_v31  ;;  %v1661_v31 = vld [vmem:[#allocation6 + $0xb8] sm:$0xff] }
 0xb8e   : > { %2484 = vmatmul.msk.f32.vlgmr.msrb.gmra.mxu1 %vm601_vm2, %v1356_v32 }
 0xb8f   : > { %1624 = vmatpush.msrb.mxu1 %v1611_v15 }
 0xb91   : > { %1625 = vmatpush.msrb.mxu1 %v1610_v16  ;;  %v1832_v16 = vld [vmem:[#allocation4 + $0xd8] sm:$0xff] }
 0xb93   : > { %1626 = vmatpush.msrb.mxu1 %v1609_v17  ;;  %v1831_v17 = vld [vmem:[#allocation4 + $0xd0] sm:$0xff] }
 0xb95   : > { %1627 = vmatpush.msrb.mxu1 %v1608_v18  ;;  %v1829_v18 = vld [vmem:[#allocation4 + $0xc0] sm:$0xff] }
 0xc0b   : > { %v1381_v41 = vpop.f32.mrf.mxu1 }
 0xc0c   : > { %v1384_v42 = vmul.f32 %v1381_v41, %v1381_v41 }
 0xc0e   : > { %v1385_v43 = vmul.f32 %v1384_v42, %v1381_v41 }
 0xc10   : > { %v1386_v44 = vmul.f32 0.044715, %v1385_v43 }
 0xc12   : > { %v1387_v45 = vadd.f32 %v1386_v44, %v1381_v41 }
 0xc14   : > { %v1388_v47 = vmul.f32 0.7978846, %v1387_v45 }
 0xc16   : > { %2617 = vtanh.f32 %v1388_v47 }
 0xc1c   : > { %v2618_v48 = vpop.eup %2617 }
 0xc1d   : > { %v1390_v49 = vadd.f32 1.0, %v2618_v48 }
 0xc1f   : > { %v1391_v50 = vmul.f32 0.5, %v1390_v49 }
 0xc21   : > { %v1392_v51 = vmul.f32 %v1391_v50, %v1381_v41 }
 0xc23   : > { %2485 = vmatmul.msk.f32.vlgmr.msra.gmra.mxu2 %vm1401_vm15, %v1392_v51 }
 0xca6   : > { %v1422_v52 = vpop.f32.mrf.mxu2 }
 0xca7   : > { %v3073_v46 = vadd.f32 %v1422_v52, %v3047_v9  ;;  %v1634_v9 = vld [vmem:[#allocation4 + $0xa8] sm:$0xff] }
 0xca8   : > { %1651 = vmatpush.msrb.mxu2 %v1634_v9 }
 0xca9   : > { %v1428_v53 = vsel %vm601_vm2, %v3073_v46, 0.0 }
 0xcaa   : > { %1429 = vadd.xlane.f32.xlu0 %v1428_v53  ;;  %1652 = vmatpush.msrb.mxu2 %v1633_v14 }
 0xd1d   : > { %v1430_v54 = vpop.xlane.xlu0 %1429 }
 0xd1e   : > { %v1431_v55 = vmul.f32 %v1430_v54, %v2978_v12 }
 0xd20   : > { %v1432_v56 = vsub.f32 %v3073_v46, %v1431_v55 }
 0xd22   : > { %v1433_v57 = vmul.f32 %v1432_v56, %v1432_v56 }
 0xd24   : > { %v1434_v58 = vsel %vm601_vm2, %v1433_v57, 0.0 }
 0xd25   : > { %1435 = vadd.xlane.f32.xlu1 %v1434_v58 }
 0xd98   : > { %v1436_v4 = vpop.xlane.xlu1 %1435 }
 0xd99   : > { %v1437_v19 = vmul.f32 %v1436_v4, %v2978_v12  ;;  %v1830_v4 = vld [vmem:[#allocation4 + $0xc8] sm:$0xff] }
 0xd9b   : > { %v1438_v20 = vadd.f32 1e-05, %v1437_v19 }
 0xd9d   : > { %2619 = vrsqrt.f32 %v1438_v20  ;;  %vm1445_vm3 = vweird.f32 %v1438_v20 }
 0xda3   : > { %v2620_v21 = vpop.eup %2619 }
 0xda4   : > { %v1440_v22 = vmul.f32 %v2620_v21, %v1438_v20  ;;  %vm1446_vm0 = vweird.f32 %v2620_v21 }
 0xda5   : > { %vm1447_vm4 = vmor %vm1445_vm3, %vm1446_vm0 }
 0xda6   : > { %v1441_v23 = vmul.f32 %v2620_v21, %v1440_v22 }
 0xda8   : > { %v1442_v24 = vmul.f32 0.5, %v1441_v23 }
 0xdaa   : > { %v1443_v25 = vsub.f32 1.5, %v1442_v24 }
 0xdac   : > { %v1444_v26 = vmul.f32 %v2620_v21, %v1443_v25 }
 0xdae   : > { %v1448_v28 = vsel %vm1447_vm4, %v2620_v21, %v1444_v26 }
 0xdaf   : > { %v1449_v29 = vmul.f32 %v1448_v28, %v1432_v56 }
 0xdb1   : > { %v3084_v30 = vmul.f32 %v2592_v27, %v1449_v29 }
 0xdb3   : > { %2487 = vmatmul.msk.f32.vlgmr.msrb.gmra.mxu3 %vm601_vm2, %v3084_v30  ;;  %2488 = vmatmul.msk.f32.vlgmr.msrb.gmra.mxu0 %vm601_vm2, %v3084_v30 }
 0xdb4   : > { %2489 = vmatmul.msk.f32.vlgmr.msra.gmra.mxu1 %vm601_vm2, %v3084_v30  ;;  %2494 = vmatmul.msk.f32.vlgmr.msrb.gmra.mxu2 %vm601_vm2, %v3084_v30 }
 0xdbc   : > { %2493 = vmatmul.msk.f32.vlgmr.msrb.gmra.mxu1 %vm601_vm2, %v3084_v30 }
 0xe30   : > { %v1504_v32 = vpop.f32.mrf.mxu0 }
 0xe31   : > { %v1529_v33 = vpop.f32.mrf.mxu1  ;;  %2490 = vmatpush.xpose.msk.msra.mxu3 %vm710_vm7, %v1504_v32  ;;  %v1756_v32 = vld [vmem:[#allocation7 + $0x28] sm:$0xff] }
 0xe32   : > { %1600 = vmatpush.msra.mxu0 %v1529_v33  ;;  %1775 = vmatpush.msra.mxu2 %v1756_v32  ;;  %v1857_v33 = vld [vmem:[#allocation6 + $0xd8] sm:$0xff] }
 0xe34   : > { %1870 = vmatpush.msrb.mxu2 %v1857_v33 }
 0xe35   : > { %1674 = vmatpush.msrb.mxu3 %v1661_v31 }
 0xe36   : > { %v1479_v37 = vpop.f32.mrf.mxu3 }
 0xe37   : > { %1675 = vmatpush.msrb.mxu3 %v1660_v34  ;;  %v1654_v38 = vpop.f32.mrf.mxu2  ;;  %v1856_v34 = vld [vmem:[#allocation6 + $0xd0] sm:$0xff] }
 0xe38   : > { %2491 = vmatmul.msk.f32.vlgmr.msra.gmra.mxu3 %vm710_vm7, %v1479_v37  ;;  %2496 = vmatpush.xpose.msk.msrb.mxu0 %vm710_vm7, %v1654_v38  ;;  %v1981_v37 = vld [vmem:[#allocation2 + $0xf8] sm:$0xff] }
 0xe39   : > { %1676 = vmatpush.msrb.mxu3 %v1659_v35  ;;  %v1629_v3 = vpop.f32.mrf.mxu1  ;;  %v1855_v35 = vld [vmem:[#allocation6 + $0xc8] sm:$0xff]  ;;  %1871 = vmatpush.msrb.mxu2 %v1856_v34 }
 0xe3b   : > { %1677 = vmatpush.msrb.mxu3 %v1658_v36  ;;  %1872 = vmatpush.msrb.mxu2 %v1855_v35  ;;  %v1854_v36 = vld [vmem:[#allocation6 + $0xc0] sm:$0xff] }
 0xe3d   : > { %1798 = vmatpush.msra.mxu3 %v1606_v5  ;;  %1873 = vmatpush.msrb.mxu2 %v1854_v36  ;;  %v2028_v5 = vld [vmem:[#allocation6 + $0xe0] sm:$0xff] }
 0xe40   : > { %2495 = vmatmul.msk.f32.vlgmr.msrb.gmra.mxu3 %vm601_vm2, %v3084_v30 }
 0xebb   : > { %v1555_v39 = vpop.f32.mrf.mxu3 }
 0xebc   : > { %v1556_v40 = vadd.f32 %v1555_v39, %v3007_v63  ;;  %v1980_v39 = vld [vmem:[#allocation2 + $0xf0] sm:$0xff] }
 0xebe   : > { %v1558_v41 = vsel %vm710_vm7, %v1556_v40, -inf }
 0xebf   : > { %1559 = vmax.xlane.f32.xlu2 %v1558_v41  ;;  %v1978_v41 = vld [vmem:[#allocation2 + $0xe0] sm:$0xff] }
 0xec3   : > { %v1679_v42 = vpop.f32.mrf.mxu3 }
 0xec4   : > { %1750 = vmatpush.msra.mxu1 %v1679_v42  ;;  %v2006_v42 = vld [vmem:[#allocation4 + $0xf8] sm:$0xff] }
 0xec6   : > { %1845 = vmatpush.msrb.mxu1 %v1832_v16 }
 0xec8   : > { %1846 = vmatpush.msrb.mxu1 %v1831_v17 }
 0xeca   : > { %1847 = vmatpush.msrb.mxu1 %v1830_v4 }
 0xecc   : > { %1848 = vmatpush.msrb.mxu1 %v1829_v18 }
 0xf32   : > { %v1560_v43 = vpop.xlane.xlu2 %1559 }
 0xf33   : > { %v1561_v44 = vsub.f32 %v1556_v40, %v1560_v43  ;;  %v1979_v40 = vld [vmem:[#allocation2 + $0xe8] sm:$0xff] }
 0xf35   : > { %v1562_v45 = vmul.f32 1.442695, %v1561_v44  ;;  %v2005_v44 = vld [vmem:[#allocation4 + $0xf0] sm:$0xff] }
 0xf37   : > { %2621 = vpow2.f32 %v1562_v45 }
 0xf3d   : > { %v2622_v47 = vpop.eup %2621 }
 0xf3e   : > { %v1564_v48 = vsel %vm710_vm7, %v2622_v47, 0.0 }
 0xf3f   : > { %1565 = vadd.xlane.f32.xlu0 %v1564_v48  ;;  %v2003_v48 = vld [vmem:[#allocation4 + $0xe0] sm:$0xff] }
 0xfb2   : > { %v1566_v49 = vpop.xlane.xlu0 %1565 }
 0xfb3   : > { %2623 = vrcp.f32 %v1566_v49  ;;  %v1578_v53 = vand.u32 2147483648, %v1566_v49  ;;  %v1576_v55 = vand.u32 2147483647, %v1566_v49  ;;  %vm1572_vm6 = vweird.f32 %v1566_v49 }
 0xfb5   : > { %v1579_v57 = vor.u32 1.1754944e-38, %v1578_v53  ;;  %vm1577_vm9 = vcmp.eq.f32.partialorder %v1576_v55, 8.507059e+37 }
 0xfb9   : > { %v2624_v50 = vpop.eup %2623 }
 0xfba   : > { %v1568_v51 = vmul.f32 %v2624_v50, %v1566_v49  ;;  %vm1573_vm5 = vweird.f32 %v2624_v50  ;;  %v1952_v49 = vld [vmem:[#allocation7 + $0x30] sm:$0xff] }
 0xfbb   : > { %vm1574_vm8 = vmor %vm1572_vm6, %vm1573_vm5 }
 0xfbc   : > { %v1569_v52 = vsub.f32 1.0, %v1568_v51 }
 0xfbe   : > { %v1570_v54 = vmul.f32 %v2624_v50, %v1569_v52 }
 0xfc0   : > { %v1571_v56 = vadd.f32 %v2624_v50, %v1570_v54 }
 0xfc2   : > { %v1575_v58 = vsel %vm1574_vm8, %v2624_v50, %v1571_v56 }
 0xfc3   : > { %v1580_v59 = vsel %vm1577_vm9, %v1579_v57, %v1575_v58 }
 0xfc4   : > { %v1581_v61 = vmul.f32 %v2622_v47, %v1580_v59  ;;  %v2004_v47 = vld [vmem:[#allocation4 + $0xe8] sm:$0xff] }
 0xfc6   : > { %2492 = vmatmul.msk.f32.vlgmr.msra.gmra.mxu0 %vm710_vm7, %v1581_v61 }
 0xfc7   : > { %1820 = vmatpush.msra.mxu0 %v1807_v62 }
 0xfc9   : > { %1821 = vmatpush.msra.mxu0 %v1806_v0 }
 0xfcb   : > { %1822 = vmatpush.msra.mxu0 %v1805_v1  ;;  %v2031_v1 = vld [vmem:[#allocation6 + $0xf8] sm:$0xff] }
 0xfcd   : > { %1823 = vmatpush.msra.mxu0 %v1804_v2  ;;  %v2030_v2 = vld [vmem:[#allocation6 + $0xf0] sm:$0xff] }
 0xfce   : > { %2497 = vmatmul.msk.f32.vlgmr.msrb.gmra.mxu0 %vm710_vm7, %v1629_v3  ;;  %v2029_v3 = vld [vmem:[#allocation6 + $0xe8] sm:$0xff] }
 0xfd6   : > { %2501 = vmatmul.msk.f32.vlgmr.msra.gmra.mxu0 %vm601_vm2, %v3084_v30 }
0x1043   : > { %v1602_v6 = vpop.f32.mrf.mxu0 }
0x1044   : > { %2500 = vmatmul.msk.f32.vlgmr.msra.gmra.mxu3 %vm710_vm7, %v1602_v6 }
0x104b   : > { %v1705_v7 = vpop.f32.mrf.mxu0 }
0x104c   : > { %v1706_v8 = vadd.f32 %v1705_v7, %v3007_v63 }
0x104e   : > { %v1708_v9 = vsel %vm710_vm7, %v1706_v8, -inf }
0x104f   : > { %1709 = vmax.xlane.f32.xlu1 %v1708_v9 }
0x1053   : > { %v1825_v45 = vpop.f32.mrf.mxu0 }
0x10c2   : > { %v1710_v10 = vpop.xlane.xlu1 %1709 }
0x10c3   : > { %v1711_v11 = vsub.f32 %v1706_v8, %v1710_v10 }
0x10c5   : > { %v1712_v13 = vmul.f32 1.442695, %v1711_v11 }
0x10c7   : > { %2625 = vpow2.f32 %v1712_v13  ;;  %v1800_v50 = vpop.f32.mrf.mxu3 }
0x10cd   : > { %v2626_v14 = vpop.eup %2625 }
0x10ce   : > { %v1714_v15 = vsel %vm710_vm7, %v2626_v14, 0.0 }
0x10cf   : > { %1715 = vadd.xlane.f32.xlu2 %v1714_v15 }
0x1142   : > { %v1716_v19 = vpop.xlane.xlu2 %1715 }
0x1143   : > { %2627 = vrcp.f32 %v1716_v19  ;;  %v1728_v23 = vand.u32 2147483648, %v1716_v19  ;;  %v1726_v25 = vand.u32 2147483647, %v1716_v19  ;;  %vm1722_vm11 = vweird.f32 %v1716_v19 }
0x1145   : > { %v1729_v27 = vor.u32 1.1754944e-38, %v1728_v23  ;;  %vm1727_vm13 = vcmp.eq.f32.partialorder %v1726_v25, 8.507059e+37 }
0x1149   : > { %v2628_v20 = vpop.eup %2627 }
0x114a   : > { %v1718_v21 = vmul.f32 %v2628_v20, %v1716_v19  ;;  %vm1723_vm10 = vweird.f32 %v2628_v20 }
0x114b   : > { %vm1724_vm12 = vmor %vm1722_vm11, %vm1723_vm10 }
0x114c   : > { %v1719_v22 = vsub.f32 1.0, %v1718_v21 }
0x114e   : > { %v1720_v24 = vmul.f32 %v2628_v20, %v1719_v22 }
0x1150   : > { %v1721_v26 = vadd.f32 %v2628_v20, %v1720_v24 }
0x1152   : > { %v1725_v28 = vsel %vm1724_vm12, %v2628_v20, %v1721_v26 }
0x1153   : > { %v1730_v29 = vsel %vm1727_vm13, %v1729_v27, %v1725_v28 }
0x1154   : > { %v1731_v31 = vmul.f32 %v2626_v14, %v1730_v29 }
0x1156   : > { %2498 = vmatmul.msk.f32.vlgmr.msra.gmra.mxu1 %vm710_vm7, %v1731_v31  ;;  %v2126_v31 = vld [vmem:[#allocation7 + $0x38] sm:$0xff] }
0x1157   : > { %1971 = vmatpush.msra.mxu1 %v1952_v49 }
0x115e   : > { %2502 = vmatmul.msk.f32.vlgmr.msrb.gmra.mxu1 %vm601_vm2, %v3084_v30 }
0x11d3   : > { %v1752_v38 = vpop.f32.mrf.mxu1 }
0x11d4   : > { %2499 = vmatmul.msk.f32.vlgmr.msra.gmra.mxu2 %vm710_vm7, %v1752_v38 }
0x11d5   : > { %1994 = vmatpush.msra.mxu2 %v1981_v37 }
0x11d7   : > { %1995 = vmatpush.msra.mxu2 %v1980_v39 }
0x11d9   : > { %1996 = vmatpush.msra.mxu2 %v1979_v40 }
0x11db   : > { %v1850_v43 = vpop.f32.mrf.mxu1  ;;  %1997 = vmatpush.msra.mxu2 %v1978_v41 }
0x11dc   : > { %2503 = vmatmul.msk.f32.vlgmr.msrb.gmra.mxu2 %vm601_vm2, %v3084_v30  ;;  %2504 = vmatpush.xpose.msk.msrb.mxu3 %vm710_vm7, %v1850_v43 }
0x11df   : > { %2505 = vmatmul.msk.f32.vlgmr.msrb.gmra.mxu3 %vm710_vm7, %v1825_v45 }
0x11e0   : > { %2019 = vmatpush.msra.mxu3 %v2006_v42 }
0x11e2   : > { %2020 = vmatpush.msra.mxu3 %v2005_v44 }
0x11e4   : > { %2021 = vmatpush.msra.mxu3 %v2004_v47  ;;  %2508 = vmatmul.msk.f32.vlgmr.msra.gmra.mxu2 %vm601_vm2, %v3084_v30 }
0x11e6   : > { %2022 = vmatpush.msra.mxu3 %v2003_v48 }
0x11e7   : > { %2509 = vmatmul.msk.f32.vlgmr.msra.gmra.mxu3 %vm601_vm2, %v3084_v30 }
0x11e8   : > { %2145 = vmatpush.msrb.mxu3 %v2126_v31 }
0x1257   : > { %v1777_v51 = vpop.f32.mrf.mxu2 }
0x1258   : > { %v1801_v52 = vadd.f32 %v1800_v50, %v1777_v51 }
0x125f   : > { %v1875_v53 = vpop.f32.mrf.mxu2 }
0x1260   : > { %1946 = vmatpush.msrb.mxu0 %v1875_v53 }
0x1262   : > { %v1901_v54 = vpop.f32.mrf.mxu3  ;;  %2044 = vmatpush.msra.mxu0 %v2031_v1 }
0x1263   : > { %v1902_v55 = vadd.f32 %v1901_v54, %v3007_v63  ;;  %v2519_v54 = vld [vmem:[%s3208_s10 + $0x38] sm:$0xff] }
0x1264   : > { %2045 = vmatpush.msra.mxu0 %v2030_v2 }
0x1265   : > { %v1904_v56 = vsel %vm710_vm7, %v1902_v55, -inf }
0x1266   : > { %1905 = vmax.xlane.f32.xlu0 %v1904_v56  ;;  %2046 = vmatpush.msra.mxu0 %v2029_v3  ;;  %v2516_v56 = vld [vmem:[%s3208_s10 + $0x20] sm:$0xff] }
0x1267   : > { %v1999_v19 = vpop.f32.mrf.mxu2 }
0x1268   : > { %2047 = vmatpush.msra.mxu0 %v2028_v5  ;;  %v2593_v5 = vld [vmem:[%s3207_s9 + $0x1] ss:$0 sm:$0xff] }
0x126a   : > { %v2024_v57 = vpop.f32.mrf.mxu3 }
0x126b   : > { %2511 = vmatpush.xpose.msk.msrb.mxu1 %vm710_vm7, %v2024_v57 }
0x12d9   : > { %v1906_v58 = vpop.xlane.xlu0 %1905 }
0x12da   : > { %v1907_v59 = vsub.f32 %v1902_v55, %v1906_v58  ;;  %v2517_v55 = vld [vmem:[%s3208_s10 + $0x28] sm:$0xff] }
0x12dc   : > { %v1908_v61 = vmul.f32 1.442695, %v1907_v59 }
0x12de   : > { %2629 = vpow2.f32 %v1908_v61 }
0x12e4   : > { %v2630_v62 = vpop.eup %2629 }
0x12e5   : > { %v1910_v0 = vsel %vm710_vm7, %v2630_v62, 0.0 }
0x12e6   : > { %1911 = vadd.xlane.f32.xlu1 %v1910_v0 }
0x1359   : > { %v1912_v6 = vpop.xlane.xlu1 %1911 }
0x135a   : > { %2631 = vrcp.f32 %v1912_v6  ;;  %v1924_v10 = vand.u32 2147483648, %v1912_v6  ;;  %v1922_v13 = vand.u32 2147483647, %v1912_v6  ;;  %vm1918_vm0 = vweird.f32 %v1912_v6 }
0x135c   : > { %v1925_v15 = vor.u32 1.1754944e-38, %v1924_v10  ;;  %vm1923_vm4 = vcmp.eq.f32.partialorder %v1922_v13, 8.507059e+37  ;;  %v2224_v10 = vld [vmem:[#allocation9 + $0x70] sm:$0xff]  ;;  %v2222_v13 = vld [vmem:[#allocation9 + $0x60] sm:$0xff] }
0x1360   : > { %v2632_v7 = vpop.eup %2631 }
0x1361   : > { %v1914_v8 = vmul.f32 %v2632_v7, %v1912_v6  ;;  %vm1919_vm14 = vweird.f32 %v2632_v7 }
0x1362   : > { %vm1920_vm3 = vmor %vm1918_vm0, %vm1919_vm14  ;;  %vm2306_vm14 = vcmp.lt.s32.totalorder %v3004_v60, 7 }
0x1363   : > { %v1915_v9 = vsub.f32 1.0, %v1914_v8 }
0x1365   : > { %v1916_v11 = vmul.f32 %v2632_v7, %v1915_v9  ;;  %v2225_v9 = vld [vmem:[#allocation9 + $0x78] sm:$0xff] }
0x1367   : > { %v1917_v14 = vadd.f32 %v2632_v7, %v1916_v11  ;;  %v2223_v11 = vld [vmem:[#allocation9 + $0x68] sm:$0xff] }
0x1369   : > { %v1921_v16 = vsel %vm1920_vm3, %v2632_v7, %v1917_v14  ;;  %v2221_v14 = vld [vmem:[#allocation9 + $0x58] sm:$0xff] }
0x136a   : > { %v1926_v17 = vsel %vm1923_vm4, %v1925_v15, %v1921_v16  ;;  %v2220_v15 = vld [vmem:[#allocation9 + $0x50] sm:$0xff]  ;;  %v2219_v16 = vld [vmem:[#allocation9 + $0x48] sm:$0xff] }
0x136b   : > { %v1927_v4 = vmul.f32 %v2630_v62, %v1926_v17  ;;  %v2218_v17 = vld [vmem:[#allocation9 + $0x40] sm:$0xff] }
0x136d   : > { %2506 = vmatmul.msk.f32.vlgmr.msrb.gmra.mxu0 %vm710_vm7, %v1927_v4 }
0x136e   : > { %2200 = vmatpush.msrb.mxu0 %v2519_v54 }
0x1375   : > { %2510 = vmatmul.msk.f32.vlgmr.msra.gmra.mxu0 %vm601_vm2, %v3084_v30 }
0x13ea   : > { %v1948_v18 = vpop.f32.mrf.mxu0 }
0x13eb   : > { %2507 = vmatmul.msk.f32.vlgmr.msra.gmra.mxu1 %vm710_vm7, %v1948_v18 }
0x13ec   : > { %2237 = vmatpush.msra.mxu1 %v2225_v9 }
0x13ee   : > { %2238 = vmatpush.msra.mxu1 %v2224_v10 }
0x13f0   : > { %2239 = vmatpush.msra.mxu1 %v2223_v11 }
0x13f2   : > { %v2049_v20 = vpop.f32.mrf.mxu0  ;;  %2240 = vmatpush.msra.mxu1 %v2222_v13 }
0x13f3   : > { %2512 = vmatmul.msk.f32.vlgmr.msrb.gmra.mxu1 %vm710_vm7, %v1999_v19  ;;  %2120 = vmatpush.msrb.mxu2 %v2049_v20 }
0x13f4   : > { %2241 = vmatpush.msra.mxu1 %v2221_v14 }
0x13f6   : > { %2242 = vmatpush.msra.mxu1 %v2220_v15 }
0x13f8   : > { %2243 = vmatpush.msra.mxu1 %v2219_v16 }
0x13fa   : > { %2244 = vmatpush.msra.mxu1 %v2218_v17 }
0x1468   : > { %v1973_v21 = vpop.f32.mrf.mxu1 }
0x1469   : > { %v1976_v22 = vadd.f32 %v1973_v21, %v1801_v52 }
0x1470   : > { %v2075_v23 = vpop.f32.mrf.mxu1 }
0x1471   : > { %v2076_v24 = vadd.f32 %v2075_v23, %v3007_v63 }
0x1473   : > { %v2078_v25 = vsel %vm710_vm7, %v2076_v24, -inf }
0x1474   : > { %2079 = vmax.xlane.f32.xlu2 %v2078_v25 }
0x14e7   : > { %v2080_v26 = vpop.xlane.xlu2 %2079 }
0x14e8   : > { %v2081_v27 = vsub.f32 %v2076_v24, %v2080_v26 }
0x14ea   : > { %v2082_v28 = vmul.f32 1.442695, %v2081_v27 }
0x14ec   : > { %2633 = vpow2.f32 %v2082_v28 }
0x14f2   : > { %v2634_v30 = vpop.eup %2633 }
0x14f3   : > { %v2084_v29 = vsel %vm710_vm7, %v2634_v30, 0.0 }
0x14f4   : > { %2085 = vadd.xlane.f32.xlu0 %v2084_v29 }
0x1567   : > { %v2086_v32 = vpop.xlane.xlu0 %2085 }
0x1568   : > { %2635 = vrcp.f32 %v2086_v32  ;;  %v2098_v36 = vand.u32 2147483648, %v2086_v32  ;;  %v2096_v37 = vand.u32 2147483647, %v2086_v32  ;;  %vm2092_vm6 = vweird.f32 %v2086_v32 }
0x156a   : > { %v2099_v39 = vor.u32 1.1754944e-38, %v2098_v36  ;;  %vm2097_vm9 = vcmp.eq.f32.partialorder %v2096_v37, 8.507059e+37  ;;  %v2279_v36 = vld [vmem:[%s3211_s13 + $0x10] sm:$0xff]  ;;  %v2277_v37 = vld [vmem:[%s3211_s13] sm:$0xff] }
0x156e   : > { %v2636_v33 = vpop.eup %2635 }
0x156f   : > { %v2088_v34 = vmul.f32 %v2636_v33, %v2086_v32  ;;  %vm2093_vm5 = vweird.f32 %v2636_v33 }
0x1570   : > { %vm2094_vm8 = vmor %vm2092_vm6, %vm2093_vm5 }
0x1571   : > { %v2089_v35 = vsub.f32 1.0, %v2088_v34 }
0x1573   : > { %v2090_v63 = vmul.f32 %v2636_v33, %v2089_v35  ;;  %v2280_v35 = vld [vmem:[%s3211_s13 + $0x18] sm:$0xff] }
0x1574   : > { %2296 = vmatpush.msra.mxu2 %v2280_v35 }
0x1575   : > { %v2091_v38 = vadd.f32 %v2636_v33, %v2090_v63  ;;  %v2278_v63 = vld [vmem:[%s3211_s13 + $0x8] sm:$0xff] }
0x1576   : > { %2297 = vmatpush.msra.mxu2 %v2279_v36 }
0x1577   : > { %v2095_v40 = vsel %vm2094_vm8, %v2636_v33, %v2091_v38 }
0x1578   : > { %v2100_v41 = vsel %vm2097_vm9, %v2099_v39, %v2095_v40  ;;  %2298 = vmatpush.msra.mxu2 %v2278_v63 }
0x1579   : > { %v2101_v42 = vmul.f32 %v2634_v30, %v2100_v41 }
0x157a   : > { %2299 = vmatpush.msra.mxu2 %v2277_v37 }
0x157b   : > { %2513 = vmatmul.msk.f32.vlgmr.msrb.gmra.mxu2 %vm710_vm7, %v2101_v42 }
0x15fe   : > { %v2122_v43 = vpop.f32.mrf.mxu2 }
0x15ff   : > { %2514 = vmatmul.msk.f32.vlgmr.msrb.gmra.mxu3 %vm710_vm7, %v2122_v43 }
0x1682   : > { %v2147_v44 = vpop.f32.mrf.mxu3 }
0x1683   : > { %v2150_v45 = vadd.f32 %v2147_v44, %v1976_v22 }
0x1685   : > { %v3139_v47 = vadd.f32 %v2150_v45, %v3073_v46  ;;  %v2518_v46 = vld [vmem:[%s3208_s10 + $0x30] sm:$0xff] }
0x1686   : > { %2201 = vmatpush.msrb.mxu0 %v2518_v46 }
0x1687   : > { %v2154_v48 = vsel %vm601_vm2, %v3139_v47, 0.0 }
0x1688   : > { %2155 = vadd.xlane.f32.xlu1 %v2154_v48  ;;  %2202 = vmatpush.msrb.mxu0 %v2517_v55  ;;  %v2594_v48 = vld [vmem:[%s3210_s12] ss:$0 sm:$0xff] }
0x168a   : > { %2203 = vmatpush.msrb.mxu0 %v2516_v56 }
0x16fb   : > { %v2156_v49 = vpop.xlane.xlu1 %2155 }
0x16fc   : > { %v2157_v50 = vmul.f32 %v2156_v49, %v2978_v12 }
0x16fe   : > { %v2158_v51 = vsub.f32 %v3139_v47, %v2157_v50 }
0x1700   : > { %v2159_v52 = vmul.f32 %v2158_v51, %v2158_v51 }
0x1702   : > { %v2160_v53 = vsel %vm601_vm2, %v2159_v52, 0.0 }
0x1703   : > { %2161 = vadd.xlane.f32.xlu2 %v2160_v53 }
0x1776   : > { %v2162_v57 = vpop.xlane.xlu2 %2161 }
0x1777   : > { %v2163_v58 = vmul.f32 %v2162_v57, %v2978_v12 }
0x1779   : > { %v2164_v59 = vadd.f32 1e-05, %v2163_v58 }
0x177b   : > { %2637 = vrsqrt.f32 %v2164_v59  ;;  %vm2171_vm10 = vweird.f32 %v2164_v59 }
0x1781   : > { %v2638_v61 = vpop.eup %2637 }
0x1782   : > { %v2166_v62 = vmul.f32 %v2638_v61, %v2164_v59  ;;  %vm2172_vm7 = vweird.f32 %v2638_v61 }
0x1783   : > { %vm2173_vm11 = vmor %vm2171_vm10, %vm2172_vm7 }
0x1784   : > { %v2167_v0 = vmul.f32 %v2638_v61, %v2166_v62 }
0x1786   : > { %v2168_v1 = vmul.f32 0.5, %v2167_v0 }
0x1788   : > { %v2169_v2 = vsub.f32 1.5, %v2168_v1 }
0x178a   : > { %v2170_v3 = vmul.f32 %v2638_v61, %v2169_v2 }
0x178c   : > { %v2174_v6 = vsel %vm2173_vm11, %v2638_v61, %v2170_v3 }
0x178d   : > { %v2175_v7 = vmul.f32 %v2174_v6, %v2158_v51 }
0x178f   : > { %v2179_v8 = vmul.f32 %v2593_v5, %v2175_v7 }
0x1791   : > { %2520 = vmatmul.msk.f32.vlgmr.msrb.gmra.mxu0 %vm601_vm2, %v2179_v8 }
0x180e   : > { %v2205_v4 = vpop.f32.mrf.mxu0 }
0x180f   : > { %v2208_v18 = vmul.f32 %v2205_v4, %v2205_v4 }
0x1811   : > { %v2209_v19 = vmul.f32 %v2208_v18, %v2205_v4 }
0x1813   : > { %v2210_v20 = vmul.f32 0.044715, %v2209_v19 }
0x1815   : > { %v2211_v21 = vadd.f32 %v2210_v20, %v2205_v4 }
0x1817   : > { %v2212_v22 = vmul.f32 0.7978846, %v2211_v21 }
0x1819   : > { %2639 = vtanh.f32 %v2212_v22 }
0x181f   : > { %v2640_v23 = vpop.eup %2639 }
0x1820   : > { %v2214_v24 = vadd.f32 1.0, %v2640_v23 }
0x1822   : > { %v2215_v25 = vmul.f32 0.5, %v2214_v24 }
0x1824   : > { %v2216_v26 = vmul.f32 %v2215_v25, %v2205_v4 }
0x1826   : > { %2521 = vmatmul.msk.f32.vlgmr.msra.gmra.mxu1 %vm1401_vm15, %v2216_v26 }
0x18a3   : > { %v2246_v27 = vpop.f32.mrf.mxu1 }
0x18a4   : > { %v2249_v28 = vadd.f32 %v2246_v27, %v3139_v47 }
0x18a6   : > { %v2251_v30 = vsel %vm601_vm2, %v2249_v28, 0.0 }
0x18a7   : > { %2252 = vadd.xlane.f32.xlu0 %v2251_v30 }
0x191a   : > { %v2253_v29 = vpop.xlane.xlu0 %2252 }
0x191b   : > { %v2254_v31 = vmul.f32 %v2253_v29, %v2978_v12 }
0x191d   : > { %v2255_v32 = vsub.f32 %v2249_v28, %v2254_v31 }
0x191f   : > { %v2256_v33 = vmul.f32 %v2255_v32, %v2255_v32 }
0x1921   : > { %v2257_v34 = vsel %vm601_vm2, %v2256_v33, 0.0 }
0x1922   : > { %2258 = vadd.xlane.f32.xlu1 %v2257_v34 }
0x1995   : > { %v2259_v38 = vpop.xlane.xlu1 %2258 }
0x1996   : > { %v2260_v39 = vmul.f32 %v2259_v38, %v2978_v12  ;;  %v2304_v12 = vld [vmem:[%s558_s30] sm:$0xff] }
0x1998   : > { %v2261_v40 = vadd.f32 1e-05, %v2260_v39 }
0x199a   : > { %2641 = vrsqrt.f32 %v2261_v40  ;;  %vm2268_vm12 = vweird.f32 %v2261_v40 }
0x19a0   : > { %v2642_v41 = vpop.eup %2641 }
0x19a1   : > { %v2263_v42 = vmul.f32 %v2642_v41, %v2261_v40  ;;  %vm2269_vm15 = vweird.f32 %v2642_v41 }
0x19a2   : > { %vm2270_vm13 = vmor %vm2268_vm12, %vm2269_vm15 }
0x19a3   : > { %v2264_v43 = vmul.f32 %v2642_v41, %v2263_v42 }
0x19a5   : > { %v2265_v44 = vmul.f32 0.5, %v2264_v43 }
0x19a7   : > { %v2266_v45 = vsub.f32 1.5, %v2265_v44 }
0x19a9   : > { %v2267_v47 = vmul.f32 %v2642_v41, %v2266_v45 }
0x19ab   : > { %v2271_v49 = vsel %vm2270_vm13, %v2642_v41, %v2267_v47 }
0x19ac   : > { %v2272_v50 = vmul.f32 %v2271_v49, %v2255_v32 }
0x19ae   : > { %v2276_v51 = vmul.f32 %v2594_v48, %v2272_v50 }
0x19b0   : > { %2522 = vmatmul.msk.f32.vlgmr.msra.gmra.mxu2 %vm601_vm2, %v2276_v51 }
0x1a33   : > { %v2301_v52 = vpop.f32.mrf.mxu2 }
0x1a34   : > { %v2305_v53 = vsub.f32 %v2301_v52, %v2304_v12 }
0x1a36   : > { %v2307_v54 = vsel %vm2306_vm14, %v2305_v53, 0.0 }
0x1a37   : > { %v2308_v46 = vmul.f32 %v2307_v54, %v2307_v54 }
0x1a39   : > { %v2309_v55 = vsel %vm566_vm1, %v2308_v46, 0.0 }
0x1a3a   : > { %2310 = vadd.xlane.f32.xlu2 %v2309_v55 }
0x1aad   : > { %v2311_v56 = vpop.xlane.xlu2 %2310 }
0x1aae   : > { %v2312_v57 = vrot.slane %v2311_v56, 4 }
0x1ab0   : > { %v2313_v58 = vadd.f32 %v2312_v57, %v2311_v56 }
0x1ab2   : > { %v2314_v59 = vrot.slane %v2313_v58, 2 }
0x1ab4   : > { %v2315_v61 = vadd.f32 %v2314_v59, %v2313_v58 }
0x1ab6   : > { %v2316_v62 = vrot.slane %v2315_v61, 1 }
0x1ab8   : > { %v2317_v0 = vadd.f32 %v2316_v62, %v2315_v61 }
0x1aba   : > { %2525 = vpush %v2317_v0 }
0x1aeb   : > { %s2526_s22 = spop %2525 }
0x1aec   : > { %v2319_v60 = vstv %s2526_s22 }
0x1aed   : > { %2320 = vst [vmem:[%s562_s20] sm:$0xff] %v2319_v60 }
0x1aee PF: > { %s3223_s25 = sld [smem:[#allocation13_spill]] }
0x1af4   : > { %s27_s29 = sadd.s32 1, %s3223_s25  }
0x1af5   : > { %p24_p7 = scmp.ge.s32.totalorder %s27_s29, 4  }
0x1af7   :  { %26 = sbr.rel (!%p24_p7) target bundleno = 7 (0x7), region = 162 }
0x1afc   :  { %2340 = vsyncpa [#allocation3], 1 }
0x1afd   :  { %2342 = vsyncpa [#allocation3 + $0x1], 1 }
0x1afe   :  { %2343 = vsyncpa [#allocation5], 1 }
0x1aff   :  { %2344 = vsyncpa [#allocation8], 1 }

</bundles_post_ra>
